<compile_context>
chip_gen: v6e
topology: v6e:2x2x1
jax: 0.10.0
libtpu: 0.0.40
codegen_flags: <defaults>
</compile_context>

<pallas_src>
import functools
import math

import jax
import jax.numpy as jnp
import numpy as np
from jax import lax
from jax.experimental import pallas as pl
from jax.experimental.pallas import tpu as pltpu

_MXU_DTYPE = jnp.bfloat16          # MXU-input dtype; accumulation stays f32.
_LN_EPS = 1e-5                     # PyTorch LayerNorm default.


# --------------------------------------------------------------------------
# Small helpers
# --------------------------------------------------------------------------
def _round_up(x, m):
    return (x + m - 1) // m * m


def _pick_tile(m, prefs=(512, 256, 128)):
    """Row/query tile: prefer 512/256/128 multiples, else whole (small) dim,
    else 256 with a Pallas-padded ragged tail."""
    for t in prefs:
        if m % t == 0:
            return t
    if m <= prefs[0]:
        return m
    return 256


def _vmem_limit(block_bytes):
    # Per-kernel cap derived from the actual tile footprint (double-buffered)
    # plus compiler scratch headroom.  Floor at the 32 MiB scoped default and
    # cap at 64 MiB so it also fits v7x's physical VMEM.
    return int(min(max(2 * block_bytes + (8 << 20), 32 << 20), 64 << 20))


def _compiler_params(grid_rank, block_bytes):
    return pltpu.CompilerParams(
        dimension_semantics=("parallel",) * grid_rank,
        vmem_limit_bytes=_vmem_limit(block_bytes),
    )


# --------------------------------------------------------------------------
# Kernel 1: M-tiled dense  y = x @ w + b  (w pre-transposed (K,N), bf16),
#           optionally splitting the N dimension into several outputs
#           (fused QKV / KV projections) so no HBM slab slicing is needed.
# --------------------------------------------------------------------------
def _dense_kernel(x_ref, w_ref, b_ref, *o_refs, relu, splits):
    x = x_ref[...].astype(_MXU_DTYPE)
    y = jnp.dot(x, w_ref[...], preferred_element_type=jnp.float32) + b_ref[...]
    if relu:
        y = jnp.maximum(y, 0.0)
    off = 0
    for o_ref, n in zip(o_refs, splits):
        o_ref[...] = y[:, off:off + n]
        off += n


def dense(x2d, w_kn, b, splits=None, relu=False):
    m, k = x2d.shape
    n = w_kn.shape[1]
    multi = splits is not None and len(splits) > 1
    if splits is None:
        splits = (n,)
    assert sum(splits) == n
    tm = _pick_tile(m)
    grid = (pl.cdiv(m, tm),)

    if multi:
        out_shape = tuple(jax.ShapeDtypeStruct((m, ni), jnp.float32) for ni in splits)
        out_specs = tuple(pl.BlockSpec((tm, ni), lambda i: (i, 0)) for ni in splits)
    else:
        out_shape = jax.ShapeDtypeStruct((m, n), jnp.float32)
        out_specs = pl.BlockSpec((tm, n), lambda i: (i, 0))

    block_bytes = 4 * tm * k + 2 * k * n + 4 * n + 4 * tm * n
    out = pl.pallas_call(
        functools.partial(_dense_kernel, relu=relu, splits=splits),
        out_shape=out_shape,
        grid=grid,
        in_specs=[
            pl.BlockSpec((tm, k), lambda i: (i, 0)),   # row tile, pipelined
            pl.BlockSpec((k, n), lambda i: (0, 0)),    # bf16 weight, resident
            pl.BlockSpec((1, n), lambda i: (0, 0)),    # bias, resident
        ],
        out_specs=out_specs,
        compiler_params=_compiler_params(1, block_bytes),
        cost_estimate=pl.CostEstimate(
            flops=2 * m * k * n,
            transcendentals=0,
            bytes_accessed=4 * m * k + 2 * k * n + 4 * n + 4 * m * n,
        ),
    )(x2d, w_kn, b.reshape(1, n))
    return out


# --------------------------------------------------------------------------
# Kernel 2: query-tiled attention block.
#   grid=(B, S//tq); per step: all heads on a (tq,E) query tile vs the full
#   (S,E) K/V block, additive causal bias hoisted out of the head loop,
#   per-head output projection accumulated into a lane-dense (tq,E) f32
#   buffer, fused residual add + LayerNorm, lane-dense (tq,E) store.
# --------------------------------------------------------------------------
def _attn_kernel(q_ref, k_ref, v_ref, res_ref, wo_ref, bo_ref, g_ref, be_ref,
                 o_ref, *, num_heads, scale, causal, tq):
    q = q_ref[...]                       # (tq, E) f32
    k = k_ref[...]                       # (S,  E) f32
    v = v_ref[...]
    s_len = k.shape[0]
    e = q.shape[-1]
    hd = e // num_heads

    if causal:
        q0 = pl.program_id(1) * tq       # global query offset of this tile
        row = q0 + lax.broadcasted_iota(jnp.int32, (tq, s_len), 0)
        col = lax.broadcasted_iota(jnp.int32, (tq, s_len), 1)
        # Additive bias computed ONCE per tile (not per head).
        mask_bias = jnp.where(row >= col, 0.0, -1e9).astype(jnp.float32)

    acc = jnp.zeros((tq, e), jnp.float32)            # lane-dense accumulator
    for h in range(num_heads):                       # static unrolled heads
        sl = slice(h * hd, (h + 1) * hd)
        qh = q[:, sl].astype(_MXU_DTYPE)
        kh = k[:, sl].astype(_MXU_DTYPE)
        vh = v[:, sl].astype(_MXU_DTYPE)
        # q @ k^T as a contraction (no materialized transpose).
        scores = lax.dot_general(
            qh, kh, (((1,), (1,)), ((), ())),
            preferred_element_type=jnp.float32) * scale
        if causal:
            scores = scores + mask_bias
        m_i = jnp.max(scores, axis=-1, keepdims=True)
        p = jnp.exp(scores - m_i)                    # f32 on the EUP
        l_i = jnp.sum(p, axis=-1, keepdims=True)
        o_h = jnp.dot(p.astype(_MXU_DTYPE), vh,
                      preferred_element_type=jnp.float32)
        o_h = o_h * pl.reciprocal(l_i, approx=True)  # divide -> EUP slot
        # Fold the output projection into the head loop: no concat, no masked
        # sub-lane stores; accumulate straight into the (tq, E) f32 buffer.
        acc = acc + jnp.dot(o_h.astype(_MXU_DTYPE), wo_ref[sl, :],
                            preferred_element_type=jnp.float32)

    # Fused bias + residual add + LayerNorm (f32).
    y = acc + bo_ref[...] + res_ref[...]
    mu = jnp.mean(y, axis=-1, keepdims=True)
    var = jnp.mean(jnp.square(y - mu), axis=-1, keepdims=True)
    o_ref[...] = (y - mu) * lax.rsqrt(var + _LN_EPS) * g_ref[...] + be_ref[...]


def attention_block(q, k, v, residual, wo_kn, bo, gamma, beta,
                    num_heads, causal):
    b, sq, e = q.shape
    skv = k.shape[1]
    hd = e // num_heads
    scale = 1.0 / math.sqrt(hd)
    tq = _pick_tile(sq)
    n_q = pl.cdiv(sq, tq)
    kernel = functools.partial(
        _attn_kernel, num_heads=num_heads, scale=scale, causal=causal, tq=tq)
    block_bytes = (4 * tq * e * 2 + 4 * skv * e * 2 + 2 * e * e + 4 * 3 * e
                   + 4 * tq * e + 4 * tq * skv)
    # Leading batch dim is block-size None (squeezed) so refs arrive as (S,E).
    return pl.pallas_call(
        kernel,
        out_shape=jax.ShapeDtypeStruct((b, sq, e), jnp.float32),
        grid=(b, n_q),
        in_specs=[
            pl.BlockSpec((None, tq, e), lambda i, j: (i, j, 0)),   # q tile
            pl.BlockSpec((None, skv, e), lambda i, j: (i, 0, 0)),  # K (index
            pl.BlockSpec((None, skv, e), lambda i, j: (i, 0, 0)),  # V  const
            pl.BlockSpec((None, tq, e), lambda i, j: (i, j, 0)),   # residual
            pl.BlockSpec((e, e), lambda i, j: (0, 0)),             # w_o (bf16)
            pl.BlockSpec((1, e), lambda i, j: (0, 0)),             # b_o
            pl.BlockSpec((1, e), lambda i, j: (0, 0)),             # ln gamma
            pl.BlockSpec((1, e), lambda i, j: (0, 0)),             # ln beta
        ],
        out_specs=pl.BlockSpec((None, tq, e), lambda i, j: (i, j, 0)),
        compiler_params=_compiler_params(2, block_bytes),
        cost_estimate=pl.CostEstimate(
            flops=b * (4 * sq * skv * e + 2 * sq * e * e),
            transcendentals=b * num_heads * sq * skv,
            bytes_accessed=4 * (3 * b * sq * e + 2 * b * skv * e)
                           + 2 * e * e + 12 * e,
        ),
    )(q, k, v, residual, wo_kn, bo.reshape(1, e),
      gamma.reshape(1, e), beta.reshape(1, e))


# --------------------------------------------------------------------------
# Kernel 3: fused FFN  y = LayerNorm(x + relu(x@w1+b1)@w2+b2)
#   hidden intermediate stays in VMEM; M-tiled, bf16 weights resident.
# --------------------------------------------------------------------------
def _ffn_kernel(x_ref, w1_ref, b1_ref, w2_ref, b2_ref, g_ref, be_ref, o_ref):
    x = x_ref[...]
    h = jnp.dot(x.astype(_MXU_DTYPE), w1_ref[...],
                preferred_element_type=jnp.float32) + b1_ref[...]
    h = jnp.maximum(h, 0.0)
    ff = jnp.dot(h.astype(_MXU_DTYPE), w2_ref[...],
                 preferred_element_type=jnp.float32) + b2_ref[...]
    y = x + ff
    mu = jnp.mean(y, axis=-1, keepdims=True)
    var = jnp.mean(jnp.square(y - mu), axis=-1, keepdims=True)
    o_ref[...] = (y - mu) * lax.rsqrt(var + _LN_EPS) * g_ref[...] + be_ref[...]


def ffn_block(x2d, w1_kn, b1, w2_kn, b2, gamma, beta):
    m, e = x2d.shape
    h = w1_kn.shape[1]
    tm = _pick_tile(m)
    block_bytes = 4 * tm * e * 2 + 2 * e * h + 2 * h * e + 4 * (h + 3 * e) + 4 * tm * h
    return pl.pallas_call(
        _ffn_kernel,
        out_shape=jax.ShapeDtypeStruct((m, e), jnp.float32),
        grid=(pl.cdiv(m, tm),),
        in_specs=[
            pl.BlockSpec((tm, e), lambda i: (i, 0)),
            pl.BlockSpec((e, h), lambda i: (0, 0)),
            pl.BlockSpec((1, h), lambda i: (0, 0)),
            pl.BlockSpec((h, e), lambda i: (0, 0)),
            pl.BlockSpec((1, e), lambda i: (0, 0)),
            pl.BlockSpec((1, e), lambda i: (0, 0)),
            pl.BlockSpec((1, e), lambda i: (0, 0)),
        ],
        out_specs=pl.BlockSpec((tm, e), lambda i: (i, 0)),
        compiler_params=_compiler_params(1, block_bytes),
        cost_estimate=pl.CostEstimate(
            flops=4 * m * e * h,
            transcendentals=0,
            bytes_accessed=4 * 2 * m * e + 2 * 2 * e * h + 4 * (h + 3 * e),
        ),
    )(x2d, w1_kn, b1.reshape(1, h), w2_kn, b2.reshape(1, e),
      gamma.reshape(1, e), beta.reshape(1, e))


# --------------------------------------------------------------------------
# One-time parameter packing: fuse QKV / KV, pre-transpose to (K, N), cast
# matmul weights to bf16, pad the vocab projection to a 128-lane multiple.
# Called ONCE outside the per-step forward, so no per-call HBM traffic.
# --------------------------------------------------------------------------
def prepare_params(p):
    bf = lambda a: a.astype(jnp.bfloat16)

    def prep_self(a):
        return {
            "w_qkv": bf(jnp.concatenate([a["w_q"], a["w_k"], a["w_v"]], 0).T),
            "b_qkv": jnp.concatenate([a["b_q"], a["b_k"], a["b_v"]]),
            "w_o": bf(a["w_o"].T), "b_o": a["b_o"],
        }

    def prep_cross(a):
        return {
            "w_q": bf(a["w_q"].T), "b_q": a["b_q"],
            "w_kv": bf(jnp.concatenate([a["w_k"], a["w_v"]], 0).T),
            "b_kv": jnp.concatenate([a["b_k"], a["b_v"]]),
            "w_o": bf(a["w_o"].T), "b_o": a["b_o"],
        }

    layers = []
    for lp in p["layers"]:
        layers.append({
            "self_attn": prep_self(lp["self_attn"]),
            "cross_attn": prep_cross(lp["cross_attn"]),
            "lin1_w": bf(lp["lin1_w"].T), "lin1_b": lp["lin1_b"],
            "lin2_w": bf(lp["lin2_w"].T), "lin2_b": lp["lin2_b"],
            "norm1_w": lp["norm1_w"], "norm1_b": lp["norm1_b"],
            "norm2_w": lp["norm2_w"], "norm2_b": lp["norm2_b"],
            "norm3_w": lp["norm3_w"], "norm3_b": lp["norm3_b"],
        })

    vocab, embed = p["fc_w"].shape
    vpad = _round_up(vocab, 128)                 # lane-dense logits store
    fc_w = jnp.zeros((embed, vpad), jnp.float32).at[:, :vocab].set(p["fc_w"].T)
    fc_b = jnp.zeros((vpad,), jnp.float32).at[:vocab].set(p["fc_b"])
    return {
        "embedding": p["embedding"], "pos_enc": p["pos_enc"],
        "fc_w": bf(fc_w), "fc_b": fc_b, "layers": layers,
    }


# --------------------------------------------------------------------------
# Model assembly (glue: free reshapes only; all math in Pallas kernels)
# --------------------------------------------------------------------------
def decoder_layer(x, mem2d, p, num_heads):
    # nn.TransformerDecoderLayer, norm_first=False (post-norm), activation=relu
    b, s, e = x.shape
    x2d = x.reshape(b * s, e)

    # --- self-attention: fused QKV projection -> three outputs, no slab slices
    sa = p["self_attn"]
    q, k, v = dense(x2d, sa["w_qkv"], sa["b_qkv"], splits=(e, e, e))
    x = attention_block(q.reshape(b, s, e), k.reshape(b, s, e),
                        v.reshape(b, s, e), x, sa["w_o"], sa["b_o"],
                        p["norm1_w"], p["norm1_b"], num_heads, causal=True)

    # --- cross-attention: Q from x, fused K/V from memory, no mask ---
    ca = p["cross_attn"]
    x2d = x.reshape(b * s, e)
    q = dense(x2d, ca["w_q"], ca["b_q"]).reshape(b, s, e)
    k, v = dense(mem2d, ca["w_kv"], ca["b_kv"], splits=(e, e))
    x = attention_block(q, k.reshape(b, s, e), v.reshape(b, s, e), x,
                        ca["w_o"], ca["b_o"],
                        p["norm2_w"], p["norm2_b"], num_heads, causal=False)

    # --- fused FFN + residual + LayerNorm ---
    y = ffn_block(x.reshape(b * s, e), p["lin1_w"], p["lin1_b"],
                  p["lin2_w"], p["lin2_b"], p["norm3_w"], p["norm3_b"])
    return y.reshape(b, s, e)


def music_transformer_forward(tokens, params, num_heads, vocab_size):
    b, s = tokens.shape
    # TODO(synk): embedding gather + positional add kept in plain JAX
    # (data-dependent gather); everything downstream runs in Pallas kernels.
    emb = jnp.take(params["embedding"], tokens, axis=0)       # (B, S, E)
    x = emb + params["pos_enc"][:, :s, :]
    memory = x                                                # decoder(x, x, ...)
    mem2d = memory.reshape(b * s, -1)
    for lp in params["layers"]:
        x = decoder_layer(x, mem2d, lp, num_heads)
    e = x.shape[-1]
    logits = dense(x.reshape(b * s, e), params["fc_w"], params["fc_b"])
    logits = logits.reshape(b, s, -1)
    return logits[:, :, :vocab_size]                          # drop lane padding


# --------------------------------------------------------------------------
# Deterministic parameter init (shapes follow the PyTorch __init__)
# --------------------------------------------------------------------------
def init_params(key, vocab, embed, num_layers, hidden, seq_len):
    keys = iter(jax.random.split(key, 128))

    def nrm(shape, scale=0.05):
        return (scale * jax.random.normal(next(keys), shape)).astype(jnp.float32)

    def attn_params():
        return {"w_q": nrm((embed, embed)), "b_q": nrm((embed,)),
                "w_k": nrm((embed, embed)), "b_k": nrm((embed,)),
                "w_v": nrm((embed, embed)), "b_v": nrm((embed,)),
                "w_o": nrm((embed, embed)), "b_o": nrm((embed,))}

    layers = []
    for _ in range(num_layers):
        layers.append({
            "self_attn": attn_params(),
            "cross_attn": attn_params(),
            "lin1_w": nrm((hidden, embed)), "lin1_b": nrm((hidden,)),
            "lin2_w": nrm((embed, hidden)), "lin2_b": nrm((embed,)),
            "norm1_w": jnp.ones((embed,), jnp.float32), "norm1_b": jnp.zeros((embed,), jnp.float32),
            "norm2_w": jnp.ones((embed,), jnp.float32), "norm2_b": jnp.zeros((embed,), jnp.float32),
            "norm3_w": jnp.ones((embed,), jnp.float32), "norm3_b": jnp.zeros((embed,), jnp.float32),
        })
    return {
        "embedding": nrm((vocab, embed), 0.1),
        "pos_enc": nrm((1, seq_len, embed), 0.02),
        "fc_w": nrm((vocab, embed)), "fc_b": nrm((vocab,)),
        "layers": layers,
    }


# --------------------------------------------------------------------------
# Pure-JAX reference for correctness
# --------------------------------------------------------------------------
def ref_forward(tokens, params, num_heads):
    b, s = tokens.shape
    x = params["embedding"][tokens] + params["pos_enc"][:, :s, :]
    memory = x
    e = x.shape[-1]
    hd = e // num_heads
    scale = 1.0 / math.sqrt(hd)
    causal = jnp.where(jnp.triu(jnp.ones((s, s)), 1) == 1, -jnp.inf, 0.0)

    def mha(q_in, k_in, v_in, p, mask):
        q = q_in @ p["w_q"].T + p["b_q"]
        k = k_in @ p["w_k"].T + p["b_k"]
        v = v_in @ p["w_v"].T + p["b_v"]
        sh = lambda t: t.reshape(b, s, num_heads, hd).transpose(0, 2, 1, 3)
        qh, kh, vh = sh(q), sh(k), sh(v)
        sc = jnp.einsum("bhqd,bhkd->bhqk", qh, kh) * scale + mask
        a = jax.nn.softmax(sc, axis=-1)
        o = jnp.einsum("bhqk,bhkd->bhqd", a, vh)
        o = o.transpose(0, 2, 1, 3).reshape(b, s, e)
        return o @ p["w_o"].T + p["b_o"]

    def ln(y, g, be):
        mu = y.mean(-1, keepdims=True)
        var = ((y - mu) ** 2).mean(-1, keepdims=True)
        return (y - mu) / jnp.sqrt(var + _LN_EPS) * g + be

    for lp in params["layers"]:
        x = ln(x + mha(x, x, x, lp["self_attn"], causal), lp["norm1_w"], lp["norm1_b"])
        x = ln(x + mha(x, memory, memory, lp["cross_attn"], 0.0), lp["norm2_w"], lp["norm2_b"])
        h = jnp.maximum(x @ lp["lin1_w"].T + lp["lin1_b"], 0.0)
        ff = h @ lp["lin2_w"].T + lp["lin2_b"]
        x = ln(x + ff, lp["norm3_w"], lp["norm3_b"])
    return x @ params["fc_w"].T + params["fc_b"]


# --------------------------------------------------------------------------
if __name__ == "__main__":
    VOCAB, EMBED, HEADS, LAYERS, HIDDEN, SEQ_LEN = 96, 32, 4, 2, 64, 8
    BATCH = 2

    root = jax.random.PRNGKey(0)
    k_par, k_tok = jax.random.split(root)
    params = init_params(k_par, VOCAB, EMBED, LAYERS, HIDDEN, SEQ_LEN)
    tokens = jax.random.randint(k_tok, (BATCH, SEQ_LEN), 0, VOCAB, dtype=jnp.int32)

    # One-time weight packing (fusion, transpose, bf16, vocab padding).
    inf_params = prepare_params(params)

    fwd = jax.jit(functools.partial(music_transformer_forward,
                                    num_heads=HEADS, vocab_size=VOCAB))
    out = fwd(tokens, inf_params)
    jax.block_until_ready(out)

    ref = ref_forward(tokens, params, HEADS)
    # bf16 MXU operands with f32 accumulation -> slightly looser tolerance.
    np.testing.assert_allclose(np.asarray(out), np.asarray(ref), rtol=2e-2, atol=2e-2)
    assert out.shape == (BATCH, SEQ_LEN, VOCAB)

    print("KERNEL_OK")
</pallas_src>

<mosaic_0001>
module attributes {stable_mosaic.version = 11 : i64} {
  func.func @_dense_kernel(%arg0: i32, %arg1: memref<16x32xf32, #tpu.memory_space<vmem>>, %arg2: memref<32x96xbf16, #tpu.memory_space<vmem>>, %arg3: memref<1x96xf32, #tpu.memory_space<vmem>>, %arg4: memref<16x32xf32, #tpu.memory_space<vmem>>, %arg5: memref<16x32xf32, #tpu.memory_space<vmem>>, %arg6: memref<16x32xf32, #tpu.memory_space<vmem>>) attributes {dimension_semantics = [#tpu.dimension_semantics<parallel>], iteration_bounds = array<i64: 1>, scalar_prefetch = 0 : i64, scratch_operands = 0 : i64, tpu.core_type = #tpu.core_type<tc>, window_params = [{transform_indices = @transform_0, window_bounds = array<i64: 16, 32>}, {pipeline_mode = #tpu.pipeline_mode<synchronous>, transform_indices = @transform_1, window_bounds = array<i64: 32, 96>}, {pipeline_mode = #tpu.pipeline_mode<synchronous>, transform_indices = @transform_2, window_bounds = array<i64: 1, 96>}, {transform_indices = @transform_3, window_bounds = array<i64: 16, 32>}, {transform_indices = @transform_4, window_bounds = array<i64: 16, 32>}, {transform_indices = @transform_5, window_bounds = array<i64: 16, 32>}]} {
    %c0 = arith.constant 0 : index
    %c0_0 = arith.constant 0 : index
    %0 = vector.load %arg1[%c0, %c0_0] : memref<16x32xf32, #tpu.memory_space<vmem>>, vector<16x32xf32>
    %1 = arith.truncf %0 : vector<16x32xf32> to vector<16x32xbf16>
    %c0_1 = arith.constant 0 : index
    %c0_2 = arith.constant 0 : index
    %2 = vector.load %arg2[%c0_1, %c0_2] : memref<32x96xbf16, #tpu.memory_space<vmem>>, vector<32x96xbf16>
    %cst = arith.constant dense<0.000000e+00> : vector<16x96xf32>
    %3 = tpu.matmul %1, %2, %cst {dimension_numbers = #tpu.dot_dimension_numbers<[1], [0], [0], [1], [0, 0, 1, 1], [], []>} : vector<16x32xbf16>, vector<32x96xbf16>, vector<16x96xf32> -> vector<16x96xf32>
    %c0_3 = arith.constant 0 : index
    %c0_4 = arith.constant 0 : index
    %4 = vector.load %arg3[%c0_3, %c0_4] : memref<1x96xf32, #tpu.memory_space<vmem>>, vector<1x96xf32>
    %5 = vector.broadcast %4 : vector<1x96xf32> to vector<16x96xf32>
    %6 = arith.addf %3, %5 : vector<16x96xf32>
    %7 = vector.extract_strided_slice %6 {offsets = [0, 0], sizes = [16, 32], strides = [1, 1]} : vector<16x96xf32> to vector<16x32xf32>
    %c0_5 = arith.constant 0 : index
    %c0_6 = arith.constant 0 : index
    %8 = vector.load %arg4[%c0_5, %c0_6] : memref<16x32xf32, #tpu.memory_space<vmem>>, vector<16x32xf32>
    tpu.vector_store %arg4[%c0_5, %c0_6], %7 {strides = array<i32>} : memref<16x32xf32, #tpu.memory_space<vmem>>, vector<16x32xf32>,
    %9 = vector.extract_strided_slice %6 {offsets = [0, 32], sizes = [16, 32], strides = [1, 1]} : vector<16x96xf32> to vector<16x32xf32>
    %c0_7 = arith.constant 0 : index
    %c0_8 = arith.constant 0 : index
    %10 = vector.load %arg5[%c0_7, %c0_8] : memref<16x32xf32, #tpu.memory_space<vmem>>, vector<16x32xf32>
    tpu.vector_store %arg5[%c0_7, %c0_8], %9 {strides = array<i32>} : memref<16x32xf32, #tpu.memory_space<vmem>>, vector<16x32xf32>,
    %11 = vector.extract_strided_slice %6 {offsets = [0, 64], sizes = [16, 32], strides = [1, 1]} : vector<16x96xf32> to vector<16x32xf32>
    %c0_9 = arith.constant 0 : index
    %c0_10 = arith.constant 0 : index
    %12 = vector.load %arg6[%c0_9, %c0_10] : memref<16x32xf32, #tpu.memory_space<vmem>>, vector<16x32xf32>
    tpu.vector_store %arg6[%c0_9, %c0_10], %11 {strides = array<i32>} : memref<16x32xf32, #tpu.memory_space<vmem>>, vector<16x32xf32>,
    return
  }
  func.func @transform_0(%arg0: i32) -> (i32, i32) {
    %c0_i32 = arith.constant 0 : i32
    %c0_i32_0 = arith.constant 0 : i32
    return %arg0, %c0_i32 : i32, i32
  }
  func.func @transform_1(%arg0: i32) -> (i32, i32) {
    %c0_i32 = arith.constant 0 : i32
    %c0_i32_0 = arith.constant 0 : i32
    %c0_i32_1 = arith.constant 0 : i32
    return %c0_i32, %c0_i32_0 : i32, i32
  }
  func.func @transform_2(%arg0: i32) -> (i32, i32) {
    %c0_i32 = arith.constant 0 : i32
    %c0_i32_0 = arith.constant 0 : i32
    %c0_i32_1 = arith.constant 0 : i32
    return %c0_i32, %c0_i32_0 : i32, i32
  }
  func.func @transform_3(%arg0: i32) -> (i32, i32) {
    %c0_i32 = arith.constant 0 : i32
    %c0_i32_0 = arith.constant 0 : i32
    return %arg0, %c0_i32 : i32, i32
  }
  func.func @transform_4(%arg0: i32) -> (i32, i32) {
    %c0_i32 = arith.constant 0 : i32
    %c0_i32_0 = arith.constant 0 : i32
    return %arg0, %c0_i32 : i32, i32
  }
  func.func @transform_5(%arg0: i32) -> (i32, i32) {
    %c0_i32 = arith.constant 0 : i32
    %c0_i32_0 = arith.constant 0 : i32
    return %arg0, %c0_i32 : i32, i32
  }
}

module attributes {stable_mosaic.version = 11 : i64} {
  func.func @_dense_kernel(%arg0: i32, %arg1: memref<16x32xf32, #tpu.memory_space<vmem>>, %arg2: memref<32x64xbf16, #tpu.memory_space<vmem>>, %arg3: memref<1x64xf32, #tpu.memory_space<vmem>>, %arg4: memref<16x32xf32, #tpu.memory_space<vmem>>, %arg5: memref<16x32xf32, #tpu.memory_space<vmem>>) attributes {dimension_semantics = [#tpu.dimension_semantics<parallel>], iteration_bounds = array<i64: 1>, scalar_prefetch = 0 : i64, scratch_operands = 0 : i64, tpu.core_type = #tpu.core_type<tc>, window_params = [{transform_indices = @transform_0, window_bounds = array<i64: 16, 32>}, {pipeline_mode = #tpu.pipeline_mode<synchronous>, transform_indices = @transform_1, window_bounds = array<i64: 32, 64>}, {pipeline_mode = #tpu.pipeline_mode<synchronous>, transform_indices = @transform_2, window_bounds = array<i64: 1, 64>}, {transform_indices = @transform_3, window_bounds = array<i64: 16, 32>}, {transform_indices = @transform_4, window_bounds = array<i64: 16, 32>}]} {
    %c0 = arith.constant 0 : index
    %c0_0 = arith.constant 0 : index
    %0 = vector.load %arg1[%c0, %c0_0] : memref<16x32xf32, #tpu.memory_space<vmem>>, vector<16x32xf32>
    %1 = arith.truncf %0 : vector<16x32xf32> to vector<16x32xbf16>
    %c0_1 = arith.constant 0 : index
    %c0_2 = arith.constant 0 : index
    %2 = vector.load %arg2[%c0_1, %c0_2] : memref<32x64xbf16, #tpu.memory_space<vmem>>, vector<32x64xbf16>
    %cst = arith.constant dense<0.000000e+00> : vector<16x64xf32>
    %3 = tpu.matmul %1, %2, %cst {dimension_numbers = #tpu.dot_dimension_numbers<[1], [0], [0], [1], [0, 0, 1, 1], [], []>} : vector<16x32xbf16>, vector<32x64xbf16>, vector<16x64xf32> -> vector<16x64xf32>
    %c0_3 = arith.constant 0 : index
    %c0_4 = arith.constant 0 : index
    %4 = vector.load %arg3[%c0_3, %c0_4] : memref<1x64xf32, #tpu.memory_space<vmem>>, vector<1x64xf32>
    %5 = vector.broadcast %4 : vector<1x64xf32> to vector<16x64xf32>
    %6 = arith.addf %3, %5 : vector<16x64xf32>
    %7 = vector.extract_strided_slice %6 {offsets = [0, 0], sizes = [16, 32], strides = [1, 1]} : vector<16x64xf32> to vector<16x32xf32>
    %c0_5 = arith.constant 0 : index
    %c0_6 = arith.constant 0 : index
    %8 = vector.load %arg4[%c0_5, %c0_6] : memref<16x32xf32, #tpu.memory_space<vmem>>, vector<16x32xf32>
    tpu.vector_store %arg4[%c0_5, %c0_6], %7 {strides = array<i32>} : memref<16x32xf32, #tpu.memory_space<vmem>>, vector<16x32xf32>,
    %9 = vector.extract_strided_slice %6 {offsets = [0, 32], sizes = [16, 32], strides = [1, 1]} : vector<16x64xf32> to vector<16x32xf32>
    %c0_7 = arith.constant 0 : index
    %c0_8 = arith.constant 0 : index
    %10 = vector.load %arg5[%c0_7, %c0_8] : memref<16x32xf32, #tpu.memory_space<vmem>>, vector<16x32xf32>
    tpu.vector_store %arg5[%c0_7, %c0_8], %9 {strides = array<i32>} : memref<16x32xf32, #tpu.memory_space<vmem>>, vector<16x32xf32>,
    return
  }
  func.func @transform_0(%arg0: i32) -> (i32, i32) {
    %c0_i32 = arith.constant 0 : i32
    %c0_i32_0 = arith.constant 0 : i32
    return %arg0, %c0_i32 : i32, i32
  }
  func.func @transform_1(%arg0: i32) -> (i32, i32) {
    %c0_i32 = arith.constant 0 : i32
    %c0_i32_0 = arith.constant 0 : i32
    %c0_i32_1 = arith.constant 0 : i32
    return %c0_i32, %c0_i32_0 : i32, i32
  }
  func.func @transform_2(%arg0: i32) -> (i32, i32) {
    %c0_i32 = arith.constant 0 : i32
    %c0_i32_0 = arith.constant 0 : i32
    %c0_i32_1 = arith.constant 0 : i32
    return %c0_i32, %c0_i32_0 : i32, i32
  }
  func.func @transform_3(%arg0: i32) -> (i32, i32) {
    %c0_i32 = arith.constant 0 : i32
    %c0_i32_0 = arith.constant 0 : i32
    return %arg0, %c0_i32 : i32, i32
  }
  func.func @transform_4(%arg0: i32) -> (i32, i32) {
    %c0_i32 = arith.constant 0 : i32
    %c0_i32_0 = arith.constant 0 : i32
    return %arg0, %c0_i32 : i32, i32
  }
}

module attributes {stable_mosaic.version = 11 : i64} {
  func.func @_dense_kernel(%arg0: i32, %arg1: memref<16x32xf32, #tpu.memory_space<vmem>>, %arg2: memref<32x32xbf16, #tpu.memory_space<vmem>>, %arg3: memref<1x32xf32, #tpu.memory_space<vmem>>, %arg4: memref<16x32xf32, #tpu.memory_space<vmem>>) attributes {dimension_semantics = [#tpu.dimension_semantics<parallel>], iteration_bounds = array<i64: 1>, scalar_prefetch = 0 : i64, scratch_operands = 0 : i64, tpu.core_type = #tpu.core_type<tc>, window_params = [{transform_indices = @transform_0, window_bounds = array<i64: 16, 32>}, {pipeline_mode = #tpu.pipeline_mode<synchronous>, transform_indices = @transform_1, window_bounds = array<i64: 32, 32>}, {pipeline_mode = #tpu.pipeline_mode<synchronous>, transform_indices = @transform_2, window_bounds = array<i64: 1, 32>}, {transform_indices = @transform_3, window_bounds = array<i64: 16, 32>}]} {
    %c0 = arith.constant 0 : index
    %c0_0 = arith.constant 0 : index
    %0 = vector.load %arg1[%c0, %c0_0] : memref<16x32xf32, #tpu.memory_space<vmem>>, vector<16x32xf32>
    %1 = arith.truncf %0 : vector<16x32xf32> to vector<16x32xbf16>
    %c0_1 = arith.constant 0 : index
    %c0_2 = arith.constant 0 : index
    %2 = vector.load %arg2[%c0_1, %c0_2] : memref<32x32xbf16, #tpu.memory_space<vmem>>, vector<32x32xbf16>
    %cst = arith.constant dense<0.000000e+00> : vector<16x32xf32>
    %3 = tpu.matmul %1, %2, %cst {dimension_numbers = #tpu.dot_dimension_numbers<[1], [0], [0], [1], [0, 0, 1, 1], [], []>} : vector<16x32xbf16>, vector<32x32xbf16>, vector<16x32xf32> -> vector<16x32xf32>
    %c0_3 = arith.constant 0 : index
    %c0_4 = arith.constant 0 : index
    %4 = vector.load %arg3[%c0_3, %c0_4] : memref<1x32xf32, #tpu.memory_space<vmem>>, vector<1x32xf32>
    %5 = vector.broadcast %4 : vector<1x32xf32> to vector<16x32xf32>
    %6 = arith.addf %3, %5 : vector<16x32xf32>
    %c0_5 = arith.constant 0 : index
    %c0_6 = arith.constant 0 : index
    %7 = vector.load %arg4[%c0_5, %c0_6] : memref<16x32xf32, #tpu.memory_space<vmem>>, vector<16x32xf32>
    tpu.vector_store %arg4[%c0_5, %c0_6], %6 {strides = array<i32>} : memref<16x32xf32, #tpu.memory_space<vmem>>, vector<16x32xf32>,
    return
  }
  func.func @transform_0(%arg0: i32) -> (i32, i32) {
    %c0_i32 = arith.constant 0 : i32
    %c0_i32_0 = arith.constant 0 : i32
    return %arg0, %c0_i32 : i32, i32
  }
  func.func @transform_1(%arg0: i32) -> (i32, i32) {
    %c0_i32 = arith.constant 0 : i32
    %c0_i32_0 = arith.constant 0 : i32
    %c0_i32_1 = arith.constant 0 : i32
    return %c0_i32, %c0_i32_0 : i32, i32
  }
  func.func @transform_2(%arg0: i32) -> (i32, i32) {
    %c0_i32 = arith.constant 0 : i32
    %c0_i32_0 = arith.constant 0 : i32
    %c0_i32_1 = arith.constant 0 : i32
    return %c0_i32, %c0_i32_0 : i32, i32
  }
  func.func @transform_3(%arg0: i32) -> (i32, i32) {
    %c0_i32 = arith.constant 0 : i32
    %c0_i32_0 = arith.constant 0 : i32
    return %arg0, %c0_i32 : i32, i32
  }
}

module attributes {stable_mosaic.version = 11 : i64} {
  func.func @_attn_kernel(%arg0: i32, %arg1: i32, %arg2: memref<1x8x32xf32, #tpu.memory_space<vmem>>, %arg3: memref<1x8x32xf32, #tpu.memory_space<vmem>>, %arg4: memref<1x8x32xf32, #tpu.memory_space<vmem>>, %arg5: memref<1x8x32xf32, #tpu.memory_space<vmem>>, %arg6: memref<32x32xbf16, #tpu.memory_space<vmem>>, %arg7: memref<1x32xf32, #tpu.memory_space<vmem>>, %arg8: memref<1x32xf32, #tpu.memory_space<vmem>>, %arg9: memref<1x32xf32, #tpu.memory_space<vmem>>, %arg10: memref<1x8x32xf32, #tpu.memory_space<vmem>>) attributes {dimension_semantics = [#tpu.dimension_semantics<parallel>, #tpu.dimension_semantics<parallel>], iteration_bounds = array<i64: 2, 1>, scalar_prefetch = 0 : i64, scratch_operands = 0 : i64, tpu.core_type = #tpu.core_type<tc>, window_params = [{transform_indices = @transform_0, window_bounds = array<i64: 1, 8, 32>}, {transform_indices = @transform_1, window_bounds = array<i64: 1, 8, 32>}, {transform_indices = @transform_2, window_bounds = array<i64: 1, 8, 32>}, {transform_indices = @transform_3, window_bounds = array<i64: 1, 8, 32>}, {pipeline_mode = #tpu.pipeline_mode<synchronous>, transform_indices = @transform_4, window_bounds = array<i64: 32, 32>}, {pipeline_mode = #tpu.pipeline_mode<synchronous>, transform_indices = @transform_5, window_bounds = array<i64: 1, 32>}, {pipeline_mode = #tpu.pipeline_mode<synchronous>, transform_indices = @transform_6, window_bounds = array<i64: 1, 32>}, {pipeline_mode = #tpu.pipeline_mode<synchronous>, transform_indices = @transform_7, window_bounds = array<i64: 1, 32>}, {transform_indices = @transform_8, window_bounds = array<i64: 1, 8, 32>}]} {
    %c0 = arith.constant 0 : index
    %c0_0 = arith.constant 0 : index
    %c0_1 = arith.constant 0 : index
    %0 = vector.load %arg2[%c0, %c0_0, %c0_1] : memref<1x8x32xf32, #tpu.memory_space<vmem>>, vector<1x8x32xf32>
    %1 = vector.shape_cast %0 : vector<1x8x32xf32> to vector<8x32xf32>
    %c0_2 = arith.constant 0 : index
    %c0_3 = arith.constant 0 : index
    %c0_4 = arith.constant 0 : index
    %2 = vector.load %arg3[%c0_2, %c0_3, %c0_4] : memref<1x8x32xf32, #tpu.memory_space<vmem>>, vector<1x8x32xf32>
    %3 = vector.shape_cast %2 : vector<1x8x32xf32> to vector<8x32xf32>
    %c0_5 = arith.constant 0 : index
    %c0_6 = arith.constant 0 : index
    %c0_7 = arith.constant 0 : index
    %4 = vector.load %arg4[%c0_5, %c0_6, %c0_7] : memref<1x8x32xf32, #tpu.memory_space<vmem>>, vector<1x8x32xf32>
    %5 = vector.shape_cast %4 : vector<1x8x32xf32> to vector<8x32xf32>
    %c8_i32 = arith.constant 8 : i32
    %6 = arith.muli %arg1, %c8_i32 : i32
    %7 = tpu.iota {dimensions = array<i32: 0>} : vector<8x8xi32>
    %8 = vector.broadcast %6 : i32 to vector<8x8xi32>
    %9 = arith.addi %8, %7 : vector<8x8xi32>
    %10 = tpu.iota {dimensions = array<i32: 1>} : vector<8x8xi32>
    %11 = arith.cmpi sge, %9, %10 : vector<8x8xi32>
    %cst = arith.constant 0.000000e+00 : f32
    %cst_8 = arith.constant -1.000000e+09 : f32
    %12 = vector.broadcast %cst : f32 to vector<8x8xf32>
    %13 = vector.broadcast %cst_8 : f32 to vector<8x8xf32>
    %14 = arith.select %11, %12, %13 : vector<8x8xi1>, vector<8x8xf32>
    %cst_9 = arith.constant 0.000000e+00 : f32
    %15 = vector.broadcast %cst_9 : f32 to vector<8x32xf32>
    %16 = vector.extract_strided_slice %1 {offsets = [0, 0], sizes = [8, 8], strides = [1, 1]} : vector<8x32xf32> to vector<8x8xf32>
    %17 = arith.truncf %16 : vector<8x8xf32> to vector<8x8xbf16>
    %18 = vector.extract_strided_slice %3 {offsets = [0, 0], sizes = [8, 8], strides = [1, 1]} : vector<8x32xf32> to vector<8x8xf32>
    %19 = arith.truncf %18 : vector<8x8xf32> to vector<8x8xbf16>
    %20 = vector.extract_strided_slice %5 {offsets = [0, 0], sizes = [8, 8], strides = [1, 1]} : vector<8x32xf32> to vector<8x8xf32>
    %21 = arith.truncf %20 : vector<8x8xf32> to vector<8x8xbf16>
    %cst_10 = arith.constant dense<0.000000e+00> : vector<8x8xf32>
    %22 = tpu.matmul %17, %19, %cst_10 {dimension_numbers = #tpu.dot_dimension_numbers<[1], [1], [0], [0], [0, 0, 1, 0], [], []>} : vector<8x8xbf16>, vector<8x8xbf16>, vector<8x8xf32> -> vector<8x8xf32>
    %cst_11 = arith.constant 0.353553385 : f32
    %23 = vector.broadcast %cst_11 : f32 to vector<8x8xf32>
    %24 = arith.mulf %22, %23 : vector<8x8xf32>
    %25 = arith.addf %24, %14 : vector<8x8xf32>
    %cst_12 = arith.constant dense<0xFF800000> : vector<8xf32>
    %26 = vector.multi_reduction <maximumf>, %25, %cst_12 [1] : vector<8x8xf32> to vector<8xf32>
    %27 = vector.shape_cast %26 : vector<8xf32> to vector<8x1xf32>
    %28 = vector.broadcast %27 : vector<8x1xf32> to vector<8x8xf32>
    %29 = arith.subf %25, %28 : vector<8x8xf32>
    %30 = math.exp %29 : vector<8x8xf32>
    %cst_13 = arith.constant dense<0.000000e+00> : vector<8xf32>
    %31 = vector.multi_reduction <add>, %30, %cst_13 [1] : vector<8x8xf32> to vector<8xf32>
    %32 = vector.shape_cast %31 : vector<8xf32> to vector<8x1xf32>
    %33 = arith.truncf %30 : vector<8x8xf32> to vector<8x8xbf16>
    %cst_14 = arith.constant dense<0.000000e+00> : vector<8x8xf32>
    %34 = tpu.matmul %33, %21, %cst_14 {dimension_numbers = #tpu.dot_dimension_numbers<[1], [0], [0], [1], [0, 0, 1, 1], [], []>} : vector<8x8xbf16>, vector<8x8xbf16>, vector<8x8xf32> -> vector<8x8xf32>
    %35 = tpu.reciprocal %32 {approx = true} : vector<8x1xf32> -> vector<8x1xf32>
    %36 = vector.broadcast %35 : vector<8x1xf32> to vector<8x8xf32>
    %37 = arith.mulf %34, %36 : vector<8x8xf32>
    %38 = arith.truncf %37 : vector<8x8xf32> to vector<8x8xbf16>
    %c0_15 = arith.constant 0 : index
    %c0_16 = arith.constant 0 : index
    %39 = vector.load %arg6[%c0_15, %c0_16] : memref<32x32xbf16, #tpu.memory_space<vmem>>, vector<8x32xbf16>
    %cst_17 = arith.constant dense<0.000000e+00> : vector<8x32xf32>
    %40 = tpu.matmul %38, %39, %cst_17 {dimension_numbers = #tpu.dot_dimension_numbers<[1], [0], [0], [1], [0, 0, 1, 1], [], []>} : vector<8x8xbf16>, vector<8x32xbf16>, vector<8x32xf32> -> vector<8x32xf32>
    %41 = arith.addf %15, %40 : vector<8x32xf32>
    %42 = vector.extract_strided_slice %1 {offsets = [0, 8], sizes = [8, 8], strides = [1, 1]} : vector<8x32xf32> to vector<8x8xf32>
    %43 = arith.truncf %42 : vector<8x8xf32> to vector<8x8xbf16>
    %44 = vector.extract_strided_slice %3 {offsets = [0, 8], sizes = [8, 8], strides = [1, 1]} : vector<8x32xf32> to vector<8x8xf32>
    %45 = arith.truncf %44 : vector<8x8xf32> to vector<8x8xbf16>
    %46 = vector.extract_strided_slice %5 {offsets = [0, 8], sizes = [8, 8], strides = [1, 1]} : vector<8x32xf32> to vector<8x8xf32>
    %47 = arith.truncf %46 : vector<8x8xf32> to vector<8x8xbf16>
    %cst_18 = arith.constant dense<0.000000e+00> : vector<8x8xf32>
    %48 = tpu.matmul %43, %45, %cst_18 {dimension_numbers = #tpu.dot_dimension_numbers<[1], [1], [0], [0], [0, 0, 1, 0], [], []>} : vector<8x8xbf16>, vector<8x8xbf16>, vector<8x8xf32> -> vector<8x8xf32>
    %cst_19 = arith.constant 0.353553385 : f32
    %49 = vector.broadcast %cst_19 : f32 to vector<8x8xf32>
    %50 = arith.mulf %48, %49 : vector<8x8xf32>
    %51 = arith.addf %50, %14 : vector<8x8xf32>
    %cst_20 = arith.constant dense<0xFF800000> : vector<8xf32>
    %52 = vector.multi_reduction <maximumf>, %51, %cst_20 [1] : vector<8x8xf32> to vector<8xf32>
    %53 = vector.shape_cast %52 : vector<8xf32> to vector<8x1xf32>
    %54 = vector.broadcast %53 : vector<8x1xf32> to vector<8x8xf32>
    %55 = arith.subf %51, %54 : vector<8x8xf32>
    %56 = math.exp %55 : vector<8x8xf32>
    %cst_21 = arith.constant dense<0.000000e+00> : vector<8xf32>
    %57 = vector.multi_reduction <add>, %56, %cst_21 [1] : vector<8x8xf32> to vector<8xf32>
    %58 = vector.shape_cast %57 : vector<8xf32> to vector<8x1xf32>
    %59 = arith.truncf %56 : vector<8x8xf32> to vector<8x8xbf16>
    %cst_22 = arith.constant dense<0.000000e+00> : vector<8x8xf32>
    %60 = tpu.matmul %59, %47, %cst_22 {dimension_numbers = #tpu.dot_dimension_numbers<[1], [0], [0], [1], [0, 0, 1, 1], [], []>} : vector<8x8xbf16>, vector<8x8xbf16>, vector<8x8xf32> -> vector<8x8xf32>
    %61 = tpu.reciprocal %58 {approx = true} : vector<8x1xf32> -> vector<8x1xf32>
    %62 = vector.broadcast %61 : vector<8x1xf32> to vector<8x8xf32>
    %63 = arith.mulf %60, %62 : vector<8x8xf32>
    %64 = arith.truncf %63 : vector<8x8xf32> to vector<8x8xbf16>
    %c8 = arith.constant 8 : index
    %c0_23 = arith.constant 0 : index
    %65 = vector.load %arg6[%c8, %c0_23] : memref<32x32xbf16, #tpu.memory_space<vmem>>, vector<8x32xbf16>
    %cst_24 = arith.constant dense<0.000000e+00> : vector<8x32xf32>
    %66 = tpu.matmul %64, %65, %cst_24 {dimension_numbers = #tpu.dot_dimension_numbers<[1], [0], [0], [1], [0, 0, 1, 1], [], []>} : vector<8x8xbf16>, vector<8x32xbf16>, vector<8x32xf32> -> vector<8x32xf32>
    %67 = arith.addf %41, %66 : vector<8x32xf32>
    %68 = vector.extract_strided_slice %1 {offsets = [0, 16], sizes = [8, 8], strides = [1, 1]} : vector<8x32xf32> to vector<8x8xf32>
    %69 = arith.truncf %68 : vector<8x8xf32> to vector<8x8xbf16>
    %70 = vector.extract_strided_slice %3 {offsets = [0, 16], sizes = [8, 8], strides = [1, 1]} : vector<8x32xf32> to vector<8x8xf32>
    %71 = arith.truncf %70 : vector<8x8xf32> to vector<8x8xbf16>
    %72 = vector.extract_strided_slice %5 {offsets = [0, 16], sizes = [8, 8], strides = [1, 1]} : vector<8x32xf32> to vector<8x8xf32>
    %73 = arith.truncf %72 : vector<8x8xf32> to vector<8x8xbf16>
    %cst_25 = arith.constant dense<0.000000e+00> : vector<8x8xf32>
    %74 = tpu.matmul %69, %71, %cst_25 {dimension_numbers = #tpu.dot_dimension_numbers<[1], [1], [0], [0], [0, 0, 1, 0], [], []>} : vector<8x8xbf16>, vector<8x8xbf16>, vector<8x8xf32> -> vector<8x8xf32>
    %cst_26 = arith.constant 0.353553385 : f32
    %75 = vector.broadcast %cst_26 : f32 to vector<8x8xf32>
    %76 = arith.mulf %74, %75 : vector<8x8xf32>
    %77 = arith.addf %76, %14 : vector<8x8xf32>
    %cst_27 = arith.constant dense<0xFF800000> : vector<8xf32>
    %78 = vector.multi_reduction <maximumf>, %77, %cst_27 [1] : vector<8x8xf32> to vector<8xf32>
    %79 = vector.shape_cast %78 : vector<8xf32> to vector<8x1xf32>
    %80 = vector.broadcast %79 : vector<8x1xf32> to vector<8x8xf32>
    %81 = arith.subf %77, %80 : vector<8x8xf32>
    %82 = math.exp %81 : vector<8x8xf32>
    %cst_28 = arith.constant dense<0.000000e+00> : vector<8xf32>
    %83 = vector.multi_reduction <add>, %82, %cst_28 [1] : vector<8x8xf32> to vector<8xf32>
    %84 = vector.shape_cast %83 : vector<8xf32> to vector<8x1xf32>
    %85 = arith.truncf %82 : vector<8x8xf32> to vector<8x8xbf16>
    %cst_29 = arith.constant dense<0.000000e+00> : vector<8x8xf32>
    %86 = tpu.matmul %85, %73, %cst_29 {dimension_numbers = #tpu.dot_dimension_numbers<[1], [0], [0], [1], [0, 0, 1, 1], [], []>} : vector<8x8xbf16>, vector<8x8xbf16>, vector<8x8xf32> -> vector<8x8xf32>
    %87 = tpu.reciprocal %84 {approx = true} : vector<8x1xf32> -> vector<8x1xf32>
    %88 = vector.broadcast %87 : vector<8x1xf32> to vector<8x8xf32>
    %89 = arith.mulf %86, %88 : vector<8x8xf32>
    %90 = arith.truncf %89 : vector<8x8xf32> to vector<8x8xbf16>
    %c16 = arith.constant 16 : index
    %c0_30 = arith.constant 0 : index
    %91 = vector.load %arg6[%c16, %c0_30] : memref<32x32xbf16, #tpu.memory_space<vmem>>, vector<8x32xbf16>
    %cst_31 = arith.constant dense<0.000000e+00> : vector<8x32xf32>
    %92 = tpu.matmul %90, %91, %cst_31 {dimension_numbers = #tpu.dot_dimension_numbers<[1], [0], [0], [1], [0, 0, 1, 1], [], []>} : vector<8x8xbf16>, vector<8x32xbf16>, vector<8x32xf32> -> vector<8x32xf32>
    %93 = arith.addf %67, %92 : vector<8x32xf32>
    %94 = vector.extract_strided_slice %1 {offsets = [0, 24], sizes = [8, 8], strides = [1, 1]} : vector<8x32xf32> to vector<8x8xf32>
    %95 = arith.truncf %94 : vector<8x8xf32> to vector<8x8xbf16>
    %96 = vector.extract_strided_slice %3 {offsets = [0, 24], sizes = [8, 8], strides = [1, 1]} : vector<8x32xf32> to vector<8x8xf32>
    %97 = arith.truncf %96 : vector<8x8xf32> to vector<8x8xbf16>
    %98 = vector.extract_strided_slice %5 {offsets = [0, 24], sizes = [8, 8], strides = [1, 1]} : vector<8x32xf32> to vector<8x8xf32>
    %99 = arith.truncf %98 : vector<8x8xf32> to vector<8x8xbf16>
    %cst_32 = arith.constant dense<0.000000e+00> : vector<8x8xf32>
    %100 = tpu.matmul %95, %97, %cst_32 {dimension_numbers = #tpu.dot_dimension_numbers<[1], [1], [0], [0], [0, 0, 1, 0], [], []>} : vector<8x8xbf16>, vector<8x8xbf16>, vector<8x8xf32> -> vector<8x8xf32>
    %cst_33 = arith.constant 0.353553385 : f32
    %101 = vector.broadcast %cst_33 : f32 to vector<8x8xf32>
    %102 = arith.mulf %100, %101 : vector<8x8xf32>
    %103 = arith.addf %102, %14 : vector<8x8xf32>
    %cst_34 = arith.constant dense<0xFF800000> : vector<8xf32>
    %104 = vector.multi_reduction <maximumf>, %103, %cst_34 [1] : vector<8x8xf32> to vector<8xf32>
    %105 = vector.shape_cast %104 : vector<8xf32> to vector<8x1xf32>
    %106 = vector.broadcast %105 : vector<8x1xf32> to vector<8x8xf32>
    %107 = arith.subf %103, %106 : vector<8x8xf32>
    %108 = math.exp %107 : vector<8x8xf32>
    %cst_35 = arith.constant dense<0.000000e+00> : vector<8xf32>
    %109 = vector.multi_reduction <add>, %108, %cst_35 [1] : vector<8x8xf32> to vector<8xf32>
    %110 = vector.shape_cast %109 : vector<8xf32> to vector<8x1xf32>
    %111 = arith.truncf %108 : vector<8x8xf32> to vector<8x8xbf16>
    %cst_36 = arith.constant dense<0.000000e+00> : vector<8x8xf32>
    %112 = tpu.matmul %111, %99, %cst_36 {dimension_numbers = #tpu.dot_dimension_numbers<[1], [0], [0], [1], [0, 0, 1, 1], [], []>} : vector<8x8xbf16>, vector<8x8xbf16>, vector<8x8xf32> -> vector<8x8xf32>
    %113 = tpu.reciprocal %110 {approx = true} : vector<8x1xf32> -> vector<8x1xf32>
    %114 = vector.broadcast %113 : vector<8x1xf32> to vector<8x8xf32>
    %115 = arith.mulf %112, %114 : vector<8x8xf32>
    %116 = arith.truncf %115 : vector<8x8xf32> to vector<8x8xbf16>
    %c24 = arith.constant 24 : index
    %c0_37 = arith.constant 0 : index
    %117 = vector.load %arg6[%c24, %c0_37] : memref<32x32xbf16, #tpu.memory_space<vmem>>, vector<8x32xbf16>
    %cst_38 = arith.constant dense<0.000000e+00> : vector<8x32xf32>
    %118 = tpu.matmul %116, %117, %cst_38 {dimension_numbers = #tpu.dot_dimension_numbers<[1], [0], [0], [1], [0, 0, 1, 1], [], []>} : vector<8x8xbf16>, vector<8x32xbf16>, vector<8x32xf32> -> vector<8x32xf32>
    %119 = arith.addf %93, %118 : vector<8x32xf32>
    %c0_39 = arith.constant 0 : index
    %c0_40 = arith.constant 0 : index
    %120 = vector.load %arg7[%c0_39, %c0_40] : memref<1x32xf32, #tpu.memory_space<vmem>>, vector<1x32xf32>
    %121 = vector.broadcast %120 : vector<1x32xf32> to vector<8x32xf32>
    %122 = arith.addf %119, %121 : vector<8x32xf32>
    %c0_41 = arith.constant 0 : index
    %c0_42 = arith.constant 0 : index
    %c0_43 = arith.constant 0 : index
    %123 = vector.load %arg5[%c0_41, %c0_42, %c0_43] : memref<1x8x32xf32, #tpu.memory_space<vmem>>, vector<1x8x32xf32>
    %124 = vector.shape_cast %123 : vector<1x8x32xf32> to vector<8x32xf32>
    %125 = arith.addf %122, %124 : vector<8x32xf32>
    %cst_44 = arith.constant dense<0.000000e+00> : vector<8xf32>
    %126 = vector.multi_reduction <add>, %125, %cst_44 [1] : vector<8x32xf32> to vector<8xf32>
    %127 = vector.shape_cast %126 : vector<8xf32> to vector<8x1xf32>
    %cst_45 = arith.constant 3.200000e+01 : f32
    %128 = vector.broadcast %cst_45 : f32 to vector<8x1xf32>
    %129 = arith.divf %127, %128 : vector<8x1xf32>
    %130 = vector.broadcast %129 : vector<8x1xf32> to vector<8x32xf32>
    %131 = arith.subf %125, %130 : vector<8x32xf32>
    %132 = arith.mulf %131, %131 : vector<8x32xf32>
    %cst_46 = arith.constant dense<0.000000e+00> : vector<8xf32>
    %133 = vector.multi_reduction <add>, %132, %cst_46 [1] : vector<8x32xf32> to vector<8xf32>
    %134 = vector.shape_cast %133 : vector<8xf32> to vector<8x1xf32>
    %cst_47 = arith.constant 3.200000e+01 : f32
    %135 = vector.broadcast %cst_47 : f32 to vector<8x1xf32>
    %136 = arith.divf %134, %135 : vector<8x1xf32>
    %137 = vector.broadcast %129 : vector<8x1xf32> to vector<8x32xf32>
    %138 = arith.subf %125, %137 : vector<8x32xf32>
    %cst_48 = arith.constant 9.99999974E-6 : f32
    %139 = vector.broadcast %cst_48 : f32 to vector<8x1xf32>
    %140 = arith.addf %136, %139 : vector<8x1xf32>
    %141 = math.rsqrt %140 : vector<8x1xf32>
    %142 = vector.broadcast %141 : vector<8x1xf32> to vector<8x32xf32>
    %143 = arith.mulf %138, %142 : vector<8x32xf32>
    %c0_49 = arith.constant 0 : index
    %c0_50 = arith.constant 0 : index
    %144 = vector.load %arg8[%c0_49, %c0_50] : memref<1x32xf32, #tpu.memory_space<vmem>>, vector<1x32xf32>
    %145 = vector.broadcast %144 : vector<1x32xf32> to vector<8x32xf32>
    %146 = arith.mulf %143, %145 : vector<8x32xf32>
    %c0_51 = arith.constant 0 : index
    %c0_52 = arith.constant 0 : index
    %147 = vector.load %arg9[%c0_51, %c0_52] : memref<1x32xf32, #tpu.memory_space<vmem>>, vector<1x32xf32>
    %148 = vector.broadcast %147 : vector<1x32xf32> to vector<8x32xf32>
    %149 = arith.addf %146, %148 : vector<8x32xf32>
    %c0_53 = arith.constant 0 : index
    %c0_54 = arith.constant 0 : index
    %c0_55 = arith.constant 0 : index
    %150 = vector.load %arg10[%c0_53, %c0_54, %c0_55] : memref<1x8x32xf32, #tpu.memory_space<vmem>>, vector<1x8x32xf32>
    %151 = vector.shape_cast %150 : vector<1x8x32xf32> to vector<8x32xf32>
    %152 = vector.shape_cast %149 : vector<8x32xf32> to vector<1x8x32xf32>
    tpu.vector_store %arg10[%c0_53, %c0_54, %c0_55], %152 {strides = array<i32>} : memref<1x8x32xf32, #tpu.memory_space<vmem>>, vector<1x8x32xf32>,
    return
  }
  func.func @transform_0(%arg0: i32, %arg1: i32) -> (i32, i32, i32) {
    %c0_i32 = arith.constant 0 : i32
    %c0_i32_0 = arith.constant 0 : i32
    return %arg0, %arg1, %c0_i32 : i32, i32, i32
  }
  func.func @transform_1(%arg0: i32, %arg1: i32) -> (i32, i32, i32) {
    %c0_i32 = arith.constant 0 : i32
    %c0_i32_0 = arith.constant 0 : i32
    %c0_i32_1 = arith.constant 0 : i32
    return %arg0, %c0_i32, %c0_i32_0 : i32, i32, i32
  }
  func.func @transform_2(%arg0: i32, %arg1: i32) -> (i32, i32, i32) {
    %c0_i32 = arith.constant 0 : i32
    %c0_i32_0 = arith.constant 0 : i32
    %c0_i32_1 = arith.constant 0 : i32
    return %arg0, %c0_i32, %c0_i32_0 : i32, i32, i32
  }
  func.func @transform_3(%arg0: i32, %arg1: i32) -> (i32, i32, i32) {
    %c0_i32 = arith.constant 0 : i32
    %c0_i32_0 = arith.constant 0 : i32
    return %arg0, %arg1, %c0_i32 : i32, i32, i32
  }
  func.func @transform_4(%arg0: i32, %arg1: i32) -> (i32, i32) {
    %c0_i32 = arith.constant 0 : i32
    %c0_i32_0 = arith.constant 0 : i32
    %c0_i32_1 = arith.constant 0 : i32
    return %c0_i32, %c0_i32_0 : i32, i32
  }
  func.func @transform_5(%arg0: i32, %arg1: i32) -> (i32, i32) {
    %c0_i32 = arith.constant 0 : i32
    %c0_i32_0 = arith.constant 0 : i32
    %c0_i32_1 = arith.constant 0 : i32
    return %c0_i32, %c0_i32_0 : i32, i32
  }
  func.func @transform_6(%arg0: i32, %arg1: i32) -> (i32, i32) {
    %c0_i32 = arith.constant 0 : i32
    %c0_i32_0 = arith.constant 0 : i32
    %c0_i32_1 = arith.constant 0 : i32
    return %c0_i32, %c0_i32_0 : i32, i32
  }
  func.func @transform_7(%arg0: i32, %arg1: i32) -> (i32, i32) {
    %c0_i32 = arith.constant 0 : i32
    %c0_i32_0 = arith.constant 0 : i32
    %c0_i32_1 = arith.constant 0 : i32
    return %c0_i32, %c0_i32_0 : i32, i32
  }
  func.func @transform_8(%arg0: i32, %arg1: i32) -> (i32, i32, i32) {
    %c0_i32 = arith.constant 0 : i32
    %c0_i32_0 = arith.constant 0 : i32
    return %arg0, %arg1, %c0_i32 : i32, i32, i32
  }
}

module attributes {stable_mosaic.version = 11 : i64} {
  func.func @_ffn_kernel(%arg0: i32, %arg1: memref<16x32xf32, #tpu.memory_space<vmem>>, %arg2: memref<32x64xbf16, #tpu.memory_space<vmem>>, %arg3: memref<1x64xf32, #tpu.memory_space<vmem>>, %arg4: memref<64x32xbf16, #tpu.memory_space<vmem>>, %arg5: memref<1x32xf32, #tpu.memory_space<vmem>>, %arg6: memref<1x32xf32, #tpu.memory_space<vmem>>, %arg7: memref<1x32xf32, #tpu.memory_space<vmem>>, %arg8: memref<16x32xf32, #tpu.memory_space<vmem>>) attributes {dimension_semantics = [#tpu.dimension_semantics<parallel>], iteration_bounds = array<i64: 1>, scalar_prefetch = 0 : i64, scratch_operands = 0 : i64, tpu.core_type = #tpu.core_type<tc>, window_params = [{transform_indices = @transform_0, window_bounds = array<i64: 16, 32>}, {pipeline_mode = #tpu.pipeline_mode<synchronous>, transform_indices = @transform_1, window_bounds = array<i64: 32, 64>}, {pipeline_mode = #tpu.pipeline_mode<synchronous>, transform_indices = @transform_2, window_bounds = array<i64: 1, 64>}, {pipeline_mode = #tpu.pipeline_mode<synchronous>, transform_indices = @transform_3, window_bounds = array<i64: 64, 32>}, {pipeline_mode = #tpu.pipeline_mode<synchronous>, transform_indices = @transform_4, window_bounds = array<i64: 1, 32>}, {pipeline_mode = #tpu.pipeline_mode<synchronous>, transform_indices = @transform_5, window_bounds = array<i64: 1, 32>}, {pipeline_mode = #tpu.pipeline_mode<synchronous>, transform_indices = @transform_6, window_bounds = array<i64: 1, 32>}, {transform_indices = @transform_7, window_bounds = array<i64: 16, 32>}]} {
    %c0 = arith.constant 0 : index
    %c0_0 = arith.constant 0 : index
    %0 = vector.load %arg1[%c0, %c0_0] : memref<16x32xf32, #tpu.memory_space<vmem>>, vector<16x32xf32>
    %1 = arith.truncf %0 : vector<16x32xf32> to vector<16x32xbf16>
    %c0_1 = arith.constant 0 : index
    %c0_2 = arith.constant 0 : index
    %2 = vector.load %arg2[%c0_1, %c0_2] : memref<32x64xbf16, #tpu.memory_space<vmem>>, vector<32x64xbf16>
    %cst = arith.constant dense<0.000000e+00> : vector<16x64xf32>
    %3 = tpu.matmul %1, %2, %cst {dimension_numbers = #tpu.dot_dimension_numbers<[1], [0], [0], [1], [0, 0, 1, 1], [], []>} : vector<16x32xbf16>, vector<32x64xbf16>, vector<16x64xf32> -> vector<16x64xf32>
    %c0_3 = arith.constant 0 : index
    %c0_4 = arith.constant 0 : index
    %4 = vector.load %arg3[%c0_3, %c0_4] : memref<1x64xf32, #tpu.memory_space<vmem>>, vector<1x64xf32>
    %5 = vector.broadcast %4 : vector<1x64xf32> to vector<16x64xf32>
    %6 = arith.addf %3, %5 : vector<16x64xf32>
    %cst_5 = arith.constant 0.000000e+00 : f32
    %7 = vector.broadcast %cst_5 : f32 to vector<16x64xf32>
    %8 = arith.maximumf %6, %7 : vector<16x64xf32>
    %9 = arith.truncf %8 : vector<16x64xf32> to vector<16x64xbf16>
    %c0_6 = arith.constant 0 : index
    %c0_7 = arith.constant 0 : index
    %10 = vector.load %arg4[%c0_6, %c0_7] : memref<64x32xbf16, #tpu.memory_space<vmem>>, vector<64x32xbf16>
    %cst_8 = arith.constant dense<0.000000e+00> : vector<16x32xf32>
    %11 = tpu.matmul %9, %10, %cst_8 {dimension_numbers = #tpu.dot_dimension_numbers<[1], [0], [0], [1], [0, 0, 1, 1], [], []>} : vector<16x64xbf16>, vector<64x32xbf16>, vector<16x32xf32> -> vector<16x32xf32>
    %c0_9 = arith.constant 0 : index
    %c0_10 = arith.constant 0 : index
    %12 = vector.load %arg5[%c0_9, %c0_10] : memref<1x32xf32, #tpu.memory_space<vmem>>, vector<1x32xf32>
    %13 = vector.broadcast %12 : vector<1x32xf32> to vector<16x32xf32>
    %14 = arith.addf %11, %13 : vector<16x32xf32>
    %15 = arith.addf %0, %14 : vector<16x32xf32>
    %cst_11 = arith.constant dense<0.000000e+00> : vector<16xf32>
    %16 = vector.multi_reduction <add>, %15, %cst_11 [1] : vector<16x32xf32> to vector<16xf32>
    %17 = vector.shape_cast %16 : vector<16xf32> to vector<16x1xf32>
    %cst_12 = arith.constant 3.200000e+01 : f32
    %18 = vector.broadcast %cst_12 : f32 to vector<16x1xf32>
    %19 = arith.divf %17, %18 : vector<16x1xf32>
    %20 = vector.broadcast %19 : vector<16x1xf32> to vector<16x32xf32>
    %21 = arith.subf %15, %20 : vector<16x32xf32>
    %22 = arith.mulf %21, %21 : vector<16x32xf32>
    %cst_13 = arith.constant dense<0.000000e+00> : vector<16xf32>
    %23 = vector.multi_reduction <add>, %22, %cst_13 [1] : vector<16x32xf32> to vector<16xf32>
    %24 = vector.shape_cast %23 : vector<16xf32> to vector<16x1xf32>
    %cst_14 = arith.constant 3.200000e+01 : f32
    %25 = vector.broadcast %cst_14 : f32 to vector<16x1xf32>
    %26 = arith.divf %24, %25 : vector<16x1xf32>
    %27 = vector.broadcast %19 : vector<16x1xf32> to vector<16x32xf32>
    %28 = arith.subf %15, %27 : vector<16x32xf32>
    %cst_15 = arith.constant 9.99999974E-6 : f32
    %29 = vector.broadcast %cst_15 : f32 to vector<16x1xf32>
    %30 = arith.addf %26, %29 : vector<16x1xf32>
    %31 = math.rsqrt %30 : vector<16x1xf32>
    %32 = vector.broadcast %31 : vector<16x1xf32> to vector<16x32xf32>
    %33 = arith.mulf %28, %32 : vector<16x32xf32>
    %c0_16 = arith.constant 0 : index
    %c0_17 = arith.constant 0 : index
    %34 = vector.load %arg6[%c0_16, %c0_17] : memref<1x32xf32, #tpu.memory_space<vmem>>, vector<1x32xf32>
    %35 = vector.broadcast %34 : vector<1x32xf32> to vector<16x32xf32>
    %36 = arith.mulf %33, %35 : vector<16x32xf32>
    %c0_18 = arith.constant 0 : index
    %c0_19 = arith.constant 0 : index
    %37 = vector.load %arg7[%c0_18, %c0_19] : memref<1x32xf32, #tpu.memory_space<vmem>>, vector<1x32xf32>
    %38 = vector.broadcast %37 : vector<1x32xf32> to vector<16x32xf32>
    %39 = arith.addf %36, %38 : vector<16x32xf32>
    %c0_20 = arith.constant 0 : index
    %c0_21 = arith.constant 0 : index
    %40 = vector.load %arg8[%c0_20, %c0_21] : memref<16x32xf32, #tpu.memory_space<vmem>>, vector<16x32xf32>
    tpu.vector_store %arg8[%c0_20, %c0_21], %39 {strides = array<i32>} : memref<16x32xf32, #tpu.memory_space<vmem>>, vector<16x32xf32>,
    return
  }
  func.func @transform_0(%arg0: i32) -> (i32, i32) {
    %c0_i32 = arith.constant 0 : i32
    %c0_i32_0 = arith.constant 0 : i32
    return %arg0, %c0_i32 : i32, i32
  }
  func.func @transform_1(%arg0: i32) -> (i32, i32) {
    %c0_i32 = arith.constant 0 : i32
    %c0_i32_0 = arith.constant 0 : i32
    %c0_i32_1 = arith.constant 0 : i32
    return %c0_i32, %c0_i32_0 : i32, i32
  }
  func.func @transform_2(%arg0: i32) -> (i32, i32) {
    %c0_i32 = arith.constant 0 : i32
    %c0_i32_0 = arith.constant 0 : i32
    %c0_i32_1 = arith.constant 0 : i32
    return %c0_i32, %c0_i32_0 : i32, i32
  }
  func.func @transform_3(%arg0: i32) -> (i32, i32) {
    %c0_i32 = arith.constant 0 : i32
    %c0_i32_0 = arith.constant 0 : i32
    %c0_i32_1 = arith.constant 0 : i32
    return %c0_i32, %c0_i32_0 : i32, i32
  }
  func.func @transform_4(%arg0: i32) -> (i32, i32) {
    %c0_i32 = arith.constant 0 : i32
    %c0_i32_0 = arith.constant 0 : i32
    %c0_i32_1 = arith.constant 0 : i32
    return %c0_i32, %c0_i32_0 : i32, i32
  }
  func.func @transform_5(%arg0: i32) -> (i32, i32) {
    %c0_i32 = arith.constant 0 : i32
    %c0_i32_0 = arith.constant 0 : i32
    %c0_i32_1 = arith.constant 0 : i32
    return %c0_i32, %c0_i32_0 : i32, i32
  }
  func.func @transform_6(%arg0: i32) -> (i32, i32) {
    %c0_i32 = arith.constant 0 : i32
    %c0_i32_0 = arith.constant 0 : i32
    %c0_i32_1 = arith.constant 0 : i32
    return %c0_i32, %c0_i32_0 : i32, i32
  }
  func.func @transform_7(%arg0: i32) -> (i32, i32) {
    %c0_i32 = arith.constant 0 : i32
    %c0_i32_0 = arith.constant 0 : i32
    return %arg0, %c0_i32 : i32, i32
  }
}

module attributes {stable_mosaic.version = 11 : i64} {
  func.func @_attn_kernel(%arg0: i32, %arg1: i32, %arg2: memref<1x8x32xf32, #tpu.memory_space<vmem>>, %arg3: memref<1x8x32xf32, #tpu.memory_space<vmem>>, %arg4: memref<1x8x32xf32, #tpu.memory_space<vmem>>, %arg5: memref<1x8x32xf32, #tpu.memory_space<vmem>>, %arg6: memref<32x32xbf16, #tpu.memory_space<vmem>>, %arg7: memref<1x32xf32, #tpu.memory_space<vmem>>, %arg8: memref<1x32xf32, #tpu.memory_space<vmem>>, %arg9: memref<1x32xf32, #tpu.memory_space<vmem>>, %arg10: memref<1x8x32xf32, #tpu.memory_space<vmem>>) attributes {dimension_semantics = [#tpu.dimension_semantics<parallel>, #tpu.dimension_semantics<parallel>], iteration_bounds = array<i64: 2, 1>, scalar_prefetch = 0 : i64, scratch_operands = 0 : i64, tpu.core_type = #tpu.core_type<tc>, window_params = [{transform_indices = @transform_0, window_bounds = array<i64: 1, 8, 32>}, {transform_indices = @transform_1, window_bounds = array<i64: 1, 8, 32>}, {transform_indices = @transform_2, window_bounds = array<i64: 1, 8, 32>}, {transform_indices = @transform_3, window_bounds = array<i64: 1, 8, 32>}, {pipeline_mode = #tpu.pipeline_mode<synchronous>, transform_indices = @transform_4, window_bounds = array<i64: 32, 32>}, {pipeline_mode = #tpu.pipeline_mode<synchronous>, transform_indices = @transform_5, window_bounds = array<i64: 1, 32>}, {pipeline_mode = #tpu.pipeline_mode<synchronous>, transform_indices = @transform_6, window_bounds = array<i64: 1, 32>}, {pipeline_mode = #tpu.pipeline_mode<synchronous>, transform_indices = @transform_7, window_bounds = array<i64: 1, 32>}, {transform_indices = @transform_8, window_bounds = array<i64: 1, 8, 32>}]} {
    %c0 = arith.constant 0 : index
    %c0_0 = arith.constant 0 : index
    %c0_1 = arith.constant 0 : index
    %0 = vector.load %arg2[%c0, %c0_0, %c0_1] : memref<1x8x32xf32, #tpu.memory_space<vmem>>, vector<1x8x32xf32>
    %1 = vector.shape_cast %0 : vector<1x8x32xf32> to vector<8x32xf32>
    %c0_2 = arith.constant 0 : index
    %c0_3 = arith.constant 0 : index
    %c0_4 = arith.constant 0 : index
    %2 = vector.load %arg3[%c0_2, %c0_3, %c0_4] : memref<1x8x32xf32, #tpu.memory_space<vmem>>, vector<1x8x32xf32>
    %3 = vector.shape_cast %2 : vector<1x8x32xf32> to vector<8x32xf32>
    %c0_5 = arith.constant 0 : index
    %c0_6 = arith.constant 0 : index
    %c0_7 = arith.constant 0 : index
    %4 = vector.load %arg4[%c0_5, %c0_6, %c0_7] : memref<1x8x32xf32, #tpu.memory_space<vmem>>, vector<1x8x32xf32>
    %5 = vector.shape_cast %4 : vector<1x8x32xf32> to vector<8x32xf32>
    %cst = arith.constant 0.000000e+00 : f32
    %6 = vector.broadcast %cst : f32 to vector<8x32xf32>
    %7 = vector.extract_strided_slice %1 {offsets = [0, 0], sizes = [8, 8], strides = [1, 1]} : vector<8x32xf32> to vector<8x8xf32>
    %8 = arith.truncf %7 : vector<8x8xf32> to vector<8x8xbf16>
    %9 = vector.extract_strided_slice %3 {offsets = [0, 0], sizes = [8, 8], strides = [1, 1]} : vector<8x32xf32> to vector<8x8xf32>
    %10 = arith.truncf %9 : vector<8x8xf32> to vector<8x8xbf16>
    %11 = vector.extract_strided_slice %5 {offsets = [0, 0], sizes = [8, 8], strides = [1, 1]} : vector<8x32xf32> to vector<8x8xf32>
    %12 = arith.truncf %11 : vector<8x8xf32> to vector<8x8xbf16>
    %cst_8 = arith.constant dense<0.000000e+00> : vector<8x8xf32>
    %13 = tpu.matmul %8, %10, %cst_8 {dimension_numbers = #tpu.dot_dimension_numbers<[1], [1], [0], [0], [0, 0, 1, 0], [], []>} : vector<8x8xbf16>, vector<8x8xbf16>, vector<8x8xf32> -> vector<8x8xf32>
    %cst_9 = arith.constant 0.353553385 : f32
    %14 = vector.broadcast %cst_9 : f32 to vector<8x8xf32>
    %15 = arith.mulf %13, %14 : vector<8x8xf32>
    %cst_10 = arith.constant dense<0xFF800000> : vector<8xf32>
    %16 = vector.multi_reduction <maximumf>, %15, %cst_10 [1] : vector<8x8xf32> to vector<8xf32>
    %17 = vector.shape_cast %16 : vector<8xf32> to vector<8x1xf32>
    %18 = vector.broadcast %17 : vector<8x1xf32> to vector<8x8xf32>
    %19 = arith.subf %15, %18 : vector<8x8xf32>
    %20 = math.exp %19 : vector<8x8xf32>
    %cst_11 = arith.constant dense<0.000000e+00> : vector<8xf32>
    %21 = vector.multi_reduction <add>, %20, %cst_11 [1] : vector<8x8xf32> to vector<8xf32>
    %22 = vector.shape_cast %21 : vector<8xf32> to vector<8x1xf32>
    %23 = arith.truncf %20 : vector<8x8xf32> to vector<8x8xbf16>
    %cst_12 = arith.constant dense<0.000000e+00> : vector<8x8xf32>
    %24 = tpu.matmul %23, %12, %cst_12 {dimension_numbers = #tpu.dot_dimension_numbers<[1], [0], [0], [1], [0, 0, 1, 1], [], []>} : vector<8x8xbf16>, vector<8x8xbf16>, vector<8x8xf32> -> vector<8x8xf32>
    %25 = tpu.reciprocal %22 {approx = true} : vector<8x1xf32> -> vector<8x1xf32>
    %26 = vector.broadcast %25 : vector<8x1xf32> to vector<8x8xf32>
    %27 = arith.mulf %24, %26 : vector<8x8xf32>
    %28 = arith.truncf %27 : vector<8x8xf32> to vector<8x8xbf16>
    %c0_13 = arith.constant 0 : index
    %c0_14 = arith.constant 0 : index
    %29 = vector.load %arg6[%c0_13, %c0_14] : memref<32x32xbf16, #tpu.memory_space<vmem>>, vector<8x32xbf16>
    %cst_15 = arith.constant dense<0.000000e+00> : vector<8x32xf32>
    %30 = tpu.matmul %28, %29, %cst_15 {dimension_numbers = #tpu.dot_dimension_numbers<[1], [0], [0], [1], [0, 0, 1, 1], [], []>} : vector<8x8xbf16>, vector<8x32xbf16>, vector<8x32xf32> -> vector<8x32xf32>
    %31 = arith.addf %6, %30 : vector<8x32xf32>
    %32 = vector.extract_strided_slice %1 {offsets = [0, 8], sizes = [8, 8], strides = [1, 1]} : vector<8x32xf32> to vector<8x8xf32>
    %33 = arith.truncf %32 : vector<8x8xf32> to vector<8x8xbf16>
    %34 = vector.extract_strided_slice %3 {offsets = [0, 8], sizes = [8, 8], strides = [1, 1]} : vector<8x32xf32> to vector<8x8xf32>
    %35 = arith.truncf %34 : vector<8x8xf32> to vector<8x8xbf16>
    %36 = vector.extract_strided_slice %5 {offsets = [0, 8], sizes = [8, 8], strides = [1, 1]} : vector<8x32xf32> to vector<8x8xf32>
    %37 = arith.truncf %36 : vector<8x8xf32> to vector<8x8xbf16>
    %cst_16 = arith.constant dense<0.000000e+00> : vector<8x8xf32>
    %38 = tpu.matmul %33, %35, %cst_16 {dimension_numbers = #tpu.dot_dimension_numbers<[1], [1], [0], [0], [0, 0, 1, 0], [], []>} : vector<8x8xbf16>, vector<8x8xbf16>, vector<8x8xf32> -> vector<8x8xf32>
    %cst_17 = arith.constant 0.353553385 : f32
    %39 = vector.broadcast %cst_17 : f32 to vector<8x8xf32>
    %40 = arith.mulf %38, %39 : vector<8x8xf32>
    %cst_18 = arith.constant dense<0xFF800000> : vector<8xf32>
    %41 = vector.multi_reduction <maximumf>, %40, %cst_18 [1] : vector<8x8xf32> to vector<8xf32>
    %42 = vector.shape_cast %41 : vector<8xf32> to vector<8x1xf32>
    %43 = vector.broadcast %42 : vector<8x1xf32> to vector<8x8xf32>
    %44 = arith.subf %40, %43 : vector<8x8xf32>
    %45 = math.exp %44 : vector<8x8xf32>
    %cst_19 = arith.constant dense<0.000000e+00> : vector<8xf32>
    %46 = vector.multi_reduction <add>, %45, %cst_19 [1] : vector<8x8xf32> to vector<8xf32>
    %47 = vector.shape_cast %46 : vector<8xf32> to vector<8x1xf32>
    %48 = arith.truncf %45 : vector<8x8xf32> to vector<8x8xbf16>
    %cst_20 = arith.constant dense<0.000000e+00> : vector<8x8xf32>
    %49 = tpu.matmul %48, %37, %cst_20 {dimension_numbers = #tpu.dot_dimension_numbers<[1], [0], [0], [1], [0, 0, 1, 1], [], []>} : vector<8x8xbf16>, vector<8x8xbf16>, vector<8x8xf32> -> vector<8x8xf32>
    %50 = tpu.reciprocal %47 {approx = true} : vector<8x1xf32> -> vector<8x1xf32>
    %51 = vector.broadcast %50 : vector<8x1xf32> to vector<8x8xf32>
    %52 = arith.mulf %49, %51 : vector<8x8xf32>
    %53 = arith.truncf %52 : vector<8x8xf32> to vector<8x8xbf16>
    %c8 = arith.constant 8 : index
    %c0_21 = arith.constant 0 : index
    %54 = vector.load %arg6[%c8, %c0_21] : memref<32x32xbf16, #tpu.memory_space<vmem>>, vector<8x32xbf16>
    %cst_22 = arith.constant dense<0.000000e+00> : vector<8x32xf32>
    %55 = tpu.matmul %53, %54, %cst_22 {dimension_numbers = #tpu.dot_dimension_numbers<[1], [0], [0], [1], [0, 0, 1, 1], [], []>} : vector<8x8xbf16>, vector<8x32xbf16>, vector<8x32xf32> -> vector<8x32xf32>
    %56 = arith.addf %31, %55 : vector<8x32xf32>
    %57 = vector.extract_strided_slice %1 {offsets = [0, 16], sizes = [8, 8], strides = [1, 1]} : vector<8x32xf32> to vector<8x8xf32>
    %58 = arith.truncf %57 : vector<8x8xf32> to vector<8x8xbf16>
    %59 = vector.extract_strided_slice %3 {offsets = [0, 16], sizes = [8, 8], strides = [1, 1]} : vector<8x32xf32> to vector<8x8xf32>
    %60 = arith.truncf %59 : vector<8x8xf32> to vector<8x8xbf16>
    %61 = vector.extract_strided_slice %5 {offsets = [0, 16], sizes = [8, 8], strides = [1, 1]} : vector<8x32xf32> to vector<8x8xf32>
    %62 = arith.truncf %61 : vector<8x8xf32> to vector<8x8xbf16>
    %cst_23 = arith.constant dense<0.000000e+00> : vector<8x8xf32>
    %63 = tpu.matmul %58, %60, %cst_23 {dimension_numbers = #tpu.dot_dimension_numbers<[1], [1], [0], [0], [0, 0, 1, 0], [], []>} : vector<8x8xbf16>, vector<8x8xbf16>, vector<8x8xf32> -> vector<8x8xf32>
    %cst_24 = arith.constant 0.353553385 : f32
    %64 = vector.broadcast %cst_24 : f32 to vector<8x8xf32>
    %65 = arith.mulf %63, %64 : vector<8x8xf32>
    %cst_25 = arith.constant dense<0xFF800000> : vector<8xf32>
    %66 = vector.multi_reduction <maximumf>, %65, %cst_25 [1] : vector<8x8xf32> to vector<8xf32>
    %67 = vector.shape_cast %66 : vector<8xf32> to vector<8x1xf32>
    %68 = vector.broadcast %67 : vector<8x1xf32> to vector<8x8xf32>
    %69 = arith.subf %65, %68 : vector<8x8xf32>
    %70 = math.exp %69 : vector<8x8xf32>
    %cst_26 = arith.constant dense<0.000000e+00> : vector<8xf32>
    %71 = vector.multi_reduction <add>, %70, %cst_26 [1] : vector<8x8xf32> to vector<8xf32>
    %72 = vector.shape_cast %71 : vector<8xf32> to vector<8x1xf32>
    %73 = arith.truncf %70 : vector<8x8xf32> to vector<8x8xbf16>
    %cst_27 = arith.constant dense<0.000000e+00> : vector<8x8xf32>
    %74 = tpu.matmul %73, %62, %cst_27 {dimension_numbers = #tpu.dot_dimension_numbers<[1], [0], [0], [1], [0, 0, 1, 1], [], []>} : vector<8x8xbf16>, vector<8x8xbf16>, vector<8x8xf32> -> vector<8x8xf32>
    %75 = tpu.reciprocal %72 {approx = true} : vector<8x1xf32> -> vector<8x1xf32>
    %76 = vector.broadcast %75 : vector<8x1xf32> to vector<8x8xf32>
    %77 = arith.mulf %74, %76 : vector<8x8xf32>
    %78 = arith.truncf %77 : vector<8x8xf32> to vector<8x8xbf16>
    %c16 = arith.constant 16 : index
    %c0_28 = arith.constant 0 : index
    %79 = vector.load %arg6[%c16, %c0_28] : memref<32x32xbf16, #tpu.memory_space<vmem>>, vector<8x32xbf16>
    %cst_29 = arith.constant dense<0.000000e+00> : vector<8x32xf32>
    %80 = tpu.matmul %78, %79, %cst_29 {dimension_numbers = #tpu.dot_dimension_numbers<[1], [0], [0], [1], [0, 0, 1, 1], [], []>} : vector<8x8xbf16>, vector<8x32xbf16>, vector<8x32xf32> -> vector<8x32xf32>
    %81 = arith.addf %56, %80 : vector<8x32xf32>
    %82 = vector.extract_strided_slice %1 {offsets = [0, 24], sizes = [8, 8], strides = [1, 1]} : vector<8x32xf32> to vector<8x8xf32>
    %83 = arith.truncf %82 : vector<8x8xf32> to vector<8x8xbf16>
    %84 = vector.extract_strided_slice %3 {offsets = [0, 24], sizes = [8, 8], strides = [1, 1]} : vector<8x32xf32> to vector<8x8xf32>
    %85 = arith.truncf %84 : vector<8x8xf32> to vector<8x8xbf16>
    %86 = vector.extract_strided_slice %5 {offsets = [0, 24], sizes = [8, 8], strides = [1, 1]} : vector<8x32xf32> to vector<8x8xf32>
    %87 = arith.truncf %86 : vector<8x8xf32> to vector<8x8xbf16>
    %cst_30 = arith.constant dense<0.000000e+00> : vector<8x8xf32>
    %88 = tpu.matmul %83, %85, %cst_30 {dimension_numbers = #tpu.dot_dimension_numbers<[1], [1], [0], [0], [0, 0, 1, 0], [], []>} : vector<8x8xbf16>, vector<8x8xbf16>, vector<8x8xf32> -> vector<8x8xf32>
    %cst_31 = arith.constant 0.353553385 : f32
    %89 = vector.broadcast %cst_31 : f32 to vector<8x8xf32>
    %90 = arith.mulf %88, %89 : vector<8x8xf32>
    %cst_32 = arith.constant dense<0xFF800000> : vector<8xf32>
    %91 = vector.multi_reduction <maximumf>, %90, %cst_32 [1] : vector<8x8xf32> to vector<8xf32>
    %92 = vector.shape_cast %91 : vector<8xf32> to vector<8x1xf32>
    %93 = vector.broadcast %92 : vector<8x1xf32> to vector<8x8xf32>
    %94 = arith.subf %90, %93 : vector<8x8xf32>
    %95 = math.exp %94 : vector<8x8xf32>
    %cst_33 = arith.constant dense<0.000000e+00> : vector<8xf32>
    %96 = vector.multi_reduction <add>, %95, %cst_33 [1] : vector<8x8xf32> to vector<8xf32>
    %97 = vector.shape_cast %96 : vector<8xf32> to vector<8x1xf32>
    %98 = arith.truncf %95 : vector<8x8xf32> to vector<8x8xbf16>
    %cst_34 = arith.constant dense<0.000000e+00> : vector<8x8xf32>
    %99 = tpu.matmul %98, %87, %cst_34 {dimension_numbers = #tpu.dot_dimension_numbers<[1], [0], [0], [1], [0, 0, 1, 1], [], []>} : vector<8x8xbf16>, vector<8x8xbf16>, vector<8x8xf32> -> vector<8x8xf32>
    %100 = tpu.reciprocal %97 {approx = true} : vector<8x1xf32> -> vector<8x1xf32>
    %101 = vector.broadcast %100 : vector<8x1xf32> to vector<8x8xf32>
    %102 = arith.mulf %99, %101 : vector<8x8xf32>
    %103 = arith.truncf %102 : vector<8x8xf32> to vector<8x8xbf16>
    %c24 = arith.constant 24 : index
    %c0_35 = arith.constant 0 : index
    %104 = vector.load %arg6[%c24, %c0_35] : memref<32x32xbf16, #tpu.memory_space<vmem>>, vector<8x32xbf16>
    %cst_36 = arith.constant dense<0.000000e+00> : vector<8x32xf32>
    %105 = tpu.matmul %103, %104, %cst_36 {dimension_numbers = #tpu.dot_dimension_numbers<[1], [0], [0], [1], [0, 0, 1, 1], [], []>} : vector<8x8xbf16>, vector<8x32xbf16>, vector<8x32xf32> -> vector<8x32xf32>
    %106 = arith.addf %81, %105 : vector<8x32xf32>
    %c0_37 = arith.constant 0 : index
    %c0_38 = arith.constant 0 : index
    %107 = vector.load %arg7[%c0_37, %c0_38] : memref<1x32xf32, #tpu.memory_space<vmem>>, vector<1x32xf32>
    %108 = vector.broadcast %107 : vector<1x32xf32> to vector<8x32xf32>
    %109 = arith.addf %106, %108 : vector<8x32xf32>
    %c0_39 = arith.constant 0 : index
    %c0_40 = arith.constant 0 : index
    %c0_41 = arith.constant 0 : index
    %110 = vector.load %arg5[%c0_39, %c0_40, %c0_41] : memref<1x8x32xf32, #tpu.memory_space<vmem>>, vector<1x8x32xf32>
    %111 = vector.shape_cast %110 : vector<1x8x32xf32> to vector<8x32xf32>
    %112 = arith.addf %109, %111 : vector<8x32xf32>
    %cst_42 = arith.constant dense<0.000000e+00> : vector<8xf32>
    %113 = vector.multi_reduction <add>, %112, %cst_42 [1] : vector<8x32xf32> to vector<8xf32>
    %114 = vector.shape_cast %113 : vector<8xf32> to vector<8x1xf32>
    %cst_43 = arith.constant 3.200000e+01 : f32
    %115 = vector.broadcast %cst_43 : f32 to vector<8x1xf32>
    %116 = arith.divf %114, %115 : vector<8x1xf32>
    %117 = vector.broadcast %116 : vector<8x1xf32> to vector<8x32xf32>
    %118 = arith.subf %112, %117 : vector<8x32xf32>
    %119 = arith.mulf %118, %118 : vector<8x32xf32>
    %cst_44 = arith.constant dense<0.000000e+00> : vector<8xf32>
    %120 = vector.multi_reduction <add>, %119, %cst_44 [1] : vector<8x32xf32> to vector<8xf32>
    %121 = vector.shape_cast %120 : vector<8xf32> to vector<8x1xf32>
    %cst_45 = arith.constant 3.200000e+01 : f32
    %122 = vector.broadcast %cst_45 : f32 to vector<8x1xf32>
    %123 = arith.divf %121, %122 : vector<8x1xf32>
    %124 = vector.broadcast %116 : vector<8x1xf32> to vector<8x32xf32>
    %125 = arith.subf %112, %124 : vector<8x32xf32>
    %cst_46 = arith.constant 9.99999974E-6 : f32
    %126 = vector.broadcast %cst_46 : f32 to vector<8x1xf32>
    %127 = arith.addf %123, %126 : vector<8x1xf32>
    %128 = math.rsqrt %127 : vector<8x1xf32>
    %129 = vector.broadcast %128 : vector<8x1xf32> to vector<8x32xf32>
    %130 = arith.mulf %125, %129 : vector<8x32xf32>
    %c0_47 = arith.constant 0 : index
    %c0_48 = arith.constant 0 : index
    %131 = vector.load %arg8[%c0_47, %c0_48] : memref<1x32xf32, #tpu.memory_space<vmem>>, vector<1x32xf32>
    %132 = vector.broadcast %131 : vector<1x32xf32> to vector<8x32xf32>
    %133 = arith.mulf %130, %132 : vector<8x32xf32>
    %c0_49 = arith.constant 0 : index
    %c0_50 = arith.constant 0 : index
    %134 = vector.load %arg9[%c0_49, %c0_50] : memref<1x32xf32, #tpu.memory_space<vmem>>, vector<1x32xf32>
    %135 = vector.broadcast %134 : vector<1x32xf32> to vector<8x32xf32>
    %136 = arith.addf %133, %135 : vector<8x32xf32>
    %c0_51 = arith.constant 0 : index
    %c0_52 = arith.constant 0 : index
    %c0_53 = arith.constant 0 : index
    %137 = vector.load %arg10[%c0_51, %c0_52, %c0_53] : memref<1x8x32xf32, #tpu.memory_space<vmem>>, vector<1x8x32xf32>
    %138 = vector.shape_cast %137 : vector<1x8x32xf32> to vector<8x32xf32>
    %139 = vector.shape_cast %136 : vector<8x32xf32> to vector<1x8x32xf32>
    tpu.vector_store %arg10[%c0_51, %c0_52, %c0_53], %139 {strides = array<i32>} : memref<1x8x32xf32, #tpu.memory_space<vmem>>, vector<1x8x32xf32>,
    return
  }
  func.func @transform_0(%arg0: i32, %arg1: i32) -> (i32, i32, i32) {
    %c0_i32 = arith.constant 0 : i32
    %c0_i32_0 = arith.constant 0 : i32
    return %arg0, %arg1, %c0_i32 : i32, i32, i32
  }
  func.func @transform_1(%arg0: i32, %arg1: i32) -> (i32, i32, i32) {
    %c0_i32 = arith.constant 0 : i32
    %c0_i32_0 = arith.constant 0 : i32
    %c0_i32_1 = arith.constant 0 : i32
    return %arg0, %c0_i32, %c0_i32_0 : i32, i32, i32
  }
  func.func @transform_2(%arg0: i32, %arg1: i32) -> (i32, i32, i32) {
    %c0_i32 = arith.constant 0 : i32
    %c0_i32_0 = arith.constant 0 : i32
    %c0_i32_1 = arith.constant 0 : i32
    return %arg0, %c0_i32, %c0_i32_0 : i32, i32, i32
  }
  func.func @transform_3(%arg0: i32, %arg1: i32) -> (i32, i32, i32) {
    %c0_i32 = arith.constant 0 : i32
    %c0_i32_0 = arith.constant 0 : i32
    return %arg0, %arg1, %c0_i32 : i32, i32, i32
  }
  func.func @transform_4(%arg0: i32, %arg1: i32) -> (i32, i32) {
    %c0_i32 = arith.constant 0 : i32
    %c0_i32_0 = arith.constant 0 : i32
    %c0_i32_1 = arith.constant 0 : i32
    return %c0_i32, %c0_i32_0 : i32, i32
  }
  func.func @transform_5(%arg0: i32, %arg1: i32) -> (i32, i32) {
    %c0_i32 = arith.constant 0 : i32
    %c0_i32_0 = arith.constant 0 : i32
    %c0_i32_1 = arith.constant 0 : i32
    return %c0_i32, %c0_i32_0 : i32, i32
  }
  func.func @transform_6(%arg0: i32, %arg1: i32) -> (i32, i32) {
    %c0_i32 = arith.constant 0 : i32
    %c0_i32_0 = arith.constant 0 : i32
    %c0_i32_1 = arith.constant 0 : i32
    return %c0_i32, %c0_i32_0 : i32, i32
  }
  func.func @transform_7(%arg0: i32, %arg1: i32) -> (i32, i32) {
    %c0_i32 = arith.constant 0 : i32
    %c0_i32_0 = arith.constant 0 : i32
    %c0_i32_1 = arith.constant 0 : i32
    return %c0_i32, %c0_i32_0 : i32, i32
  }
  func.func @transform_8(%arg0: i32, %arg1: i32) -> (i32, i32, i32) {
    %c0_i32 = arith.constant 0 : i32
    %c0_i32_0 = arith.constant 0 : i32
    return %arg0, %arg1, %c0_i32 : i32, i32, i32
  }
}

module attributes {stable_mosaic.version = 11 : i64} {
  func.func @_dense_kernel(%arg0: i32, %arg1: memref<16x32xf32, #tpu.memory_space<vmem>>, %arg2: memref<32x128xbf16, #tpu.memory_space<vmem>>, %arg3: memref<1x128xf32, #tpu.memory_space<vmem>>, %arg4: memref<16x128xf32, #tpu.memory_space<vmem>>) attributes {dimension_semantics = [#tpu.dimension_semantics<parallel>], iteration_bounds = array<i64: 1>, scalar_prefetch = 0 : i64, scratch_operands = 0 : i64, tpu.core_type = #tpu.core_type<tc>, window_params = [{transform_indices = @transform_0, window_bounds = array<i64: 16, 32>}, {pipeline_mode = #tpu.pipeline_mode<synchronous>, transform_indices = @transform_1, window_bounds = array<i64: 32, 128>}, {pipeline_mode = #tpu.pipeline_mode<synchronous>, transform_indices = @transform_2, window_bounds = array<i64: 1, 128>}, {transform_indices = @transform_3, window_bounds = array<i64: 16, 128>}]} {
    %c0 = arith.constant 0 : index
    %c0_0 = arith.constant 0 : index
    %0 = vector.load %arg1[%c0, %c0_0] : memref<16x32xf32, #tpu.memory_space<vmem>>, vector<16x32xf32>
    %1 = arith.truncf %0 : vector<16x32xf32> to vector<16x32xbf16>
    %c0_1 = arith.constant 0 : index
    %c0_2 = arith.constant 0 : index
    %2 = vector.load %arg2[%c0_1, %c0_2] : memref<32x128xbf16, #tpu.memory_space<vmem>>, vector<32x128xbf16>
    %cst = arith.constant dense<0.000000e+00> : vector<16x128xf32>
    %3 = tpu.matmul %1, %2, %cst {dimension_numbers = #tpu.dot_dimension_numbers<[1], [0], [0], [1], [0, 0, 1, 1], [], []>} : vector<16x32xbf16>, vector<32x128xbf16>, vector<16x128xf32> -> vector<16x128xf32>
    %c0_3 = arith.constant 0 : index
    %c0_4 = arith.constant 0 : index
    %4 = vector.load %arg3[%c0_3, %c0_4] : memref<1x128xf32, #tpu.memory_space<vmem>>, vector<1x128xf32>
    %5 = vector.broadcast %4 : vector<1x128xf32> to vector<16x128xf32>
    %6 = arith.addf %3, %5 : vector<16x128xf32>
    %c0_5 = arith.constant 0 : index
    %c0_6 = arith.constant 0 : index
    %7 = vector.load %arg4[%c0_5, %c0_6] : memref<16x128xf32, #tpu.memory_space<vmem>>, vector<16x128xf32>
    tpu.vector_store %arg4[%c0_5, %c0_6], %6 {strides = array<i32>} : memref<16x128xf32, #tpu.memory_space<vmem>>, vector<16x128xf32>,
    return
  }
  func.func @transform_0(%arg0: i32) -> (i32, i32) {
    %c0_i32 = arith.constant 0 : i32
    %c0_i32_0 = arith.constant 0 : i32
    return %arg0, %c0_i32 : i32, i32
  }
  func.func @transform_1(%arg0: i32) -> (i32, i32) {
    %c0_i32 = arith.constant 0 : i32
    %c0_i32_0 = arith.constant 0 : i32
    %c0_i32_1 = arith.constant 0 : i32
    return %c0_i32, %c0_i32_0 : i32, i32
  }
  func.func @transform_2(%arg0: i32) -> (i32, i32) {
    %c0_i32 = arith.constant 0 : i32
    %c0_i32_0 = arith.constant 0 : i32
    %c0_i32_1 = arith.constant 0 : i32
    return %c0_i32, %c0_i32_0 : i32, i32
  }
  func.func @transform_3(%arg0: i32) -> (i32, i32) {
    %c0_i32 = arith.constant 0 : i32
    %c0_i32_0 = arith.constant 0 : i32
    return %arg0, %c0_i32 : i32, i32
  }
}

</mosaic_0001>

<bundles_post_ra>
// kernel: music_transformer_forward.15
= control target key start
LH: loop header
LB: loop body
LE: loop exit
PB: predicated region body
PF: predicated region fallthrough
CT: control target
= control target key end

     0   :  { %v111_v0 = vmov 0.0   ;;  %vm112_vm0 = vmmov 0   ;;  %vm41_vm1 = vcmask 261120   ;;  %s154_s1 = inlined_call_operand.vmem [shape: bf16[32,32], index: 1, kind: input, shape index: {}]   ;;  %s155_s0 = inlined_call_operand.vmem [shape: f32[16,32], index: 0, kind: input, shape index: {}]   ;;  %s156_s2 = inlined_call_operand.vmem [shape: f32[1,32], index: 2, kind: input, shape index: {}]   ;;  %s157_s3 = inlined_call_operand.vmem [shape: f32[16,32], index: 3, kind: output, shape index: {}]  }
   0x1   :  { %99 = vmatprep.subr.bf16.mxu0 %v111_v0  ;;  %v109_v1 = vld [vmem:[%s154_s1 + $0x8] sm:$0xff]   ;;  %103 = vmatprep.mubr.msk.bf16.mxu0 %vm112_vm0, %v111_v0  ;;  %v110_v2 = vld [vmem:[%s154_s1] sm:$0xff]  }
   0x2   :  { %100 = vmatpush3.bf16.msra.mxu0 %v109_v1  ;;  %v15_v3 = vld [vmem:[%s155_s0] sm:$0xff]  ;;  %v16_v4 = vld [vmem:[%s155_s0 + $0x8] sm:$0xff] }
   0x3   :  { %101 = vmatprep.subr.bf16.mxu0 %v111_v0  ;;  %v17_v5 = vpack.c.bf16 %v16_v4, %v15_v3  ;;  %v92_v6 = vld [vmem:[%s156_s2] ss:$0 sm:$0xff] }
   0x6   :  { %102 = vmatpush3.bf16.msra.mxu0 %v110_v2 }
   0x9   :  { %104 = vmatmul.mubr.msk.bf16.vlgmr.msra.gmra.mxu0 %vm41_vm1, %v17_v5 }
  0xc9   :  { %v79_v7 = vpop.f32.mrf.mxu0 }
  0xca   :  { %v80_v8 = vadd.f32 %v92_v6, %v79_v7 }
  0xcb   :  { %v105_v9 = vpop.f32.mrf.mxu0 }
  0xcc   :  { %86 = vst.msk [vmem:[%s157_s3] sm:$0xff] %vm41_vm1, %v80_v8 }
  0xcd   :  { %v82_v10 = vpop.f32.mrf.mxu0 }
  0xce   :  { %v83_v11 = vadd.f32 %v92_v6, %v82_v10 }
  0xcf   :  { %v106_v12 = vpop.f32.mrf.mxu0 }
  0xd0   :  { %87 = vst.msk [vmem:[%s157_s3 + $0x8] sm:$0xff] %vm41_vm1, %v83_v11 }

// kernel: music_transformer_forward.16
= control target key start
LH: loop header
LB: loop body
LE: loop exit
PB: predicated region body
PF: predicated region fallthrough
CT: control target
= control target key end

     0   :  { %v128_v0 = vmov 0.0   ;;  %vm129_vm0 = vmmov 0   ;;  %vm43_vm1 = vcmask 261120   ;;  %s130_s26 = smov 96   ;;  %s188_s1 = inlined_call_operand.vmem [shape: bf16[32,64], index: 1, kind: input, shape index: {}]   ;;  %s189_s0 = inlined_call_operand.vmem [shape: f32[16,32], index: 0, kind: input, shape index: {}]   ;;  %s190_s2 = inlined_call_operand.vmem [shape: f32[1,64], index: 2, kind: input, shape index: {}]   ;;  %s191_s3 = inlined_call_operand.vmem [shape: f32[16,32], index: 3, kind: output, shape index: {0}]   ;;  %s192_s4 = inlined_call_operand.vmem [shape: f32[16,32], index: 4, kind: output, shape index: {1}]  }
   0x1   :  { %115 = vmatprep.subr.bf16.mxu0 %v128_v0  ;;  %v126_v1 = vld [vmem:[%s188_s1 + $0x8] sm:$0xff]   ;;  %119 = vmatprep.mubr.msk.bf16.mxu0 %vm129_vm0, %v128_v0  ;;  %v127_v2 = vld [vmem:[%s188_s1] sm:$0xff]  }
   0x2   :  { %116 = vmatpush3.bf16.msra.mxu0 %v126_v1  ;;  %v17_v3 = vld [vmem:[%s189_s0] sm:$0xff]  ;;  %v18_v4 = vld [vmem:[%s189_s0 + $0x8] sm:$0xff] }
   0x3   :  { %117 = vmatprep.subr.bf16.mxu0 %v128_v0  ;;  %v19_v5 = vpack.c.bf16 %v18_v4, %v17_v3  ;;  %v108_v6 = vld [vmem:[%s190_s2] ss:$0 sm:$0xff] }
   0x6   :  { %118 = vmatpush3.bf16.msra.mxu0 %v127_v2 }
   0x9   :  { %120 = vmatmul.mubr.msk.bf16.vlgmr.msra.gmra.mxu0 %vm43_vm1, %v19_v5 }
  0xc9   :  { %v81_v7 = vpop.f32.mrf.mxu0 }
  0xca   :  { %v82_v8 = vadd.f32 %v108_v6, %v81_v7 }
  0xcb   :  { %v121_v9 = vpop.f32.mrf.mxu0 }
  0xcc   :  { %88 = vst.msk [vmem:[%s191_s3] sm:$0xff] %vm43_vm1, %v82_v8  ;;  %92 = vrot.lane.b32.xlu0 %v82_v8, %s130_s26 }
  0xcd   :  { %v84_v10 = vpop.f32.mrf.mxu0 }
  0xce   :  { %v85_v11 = vadd.f32 %v108_v6, %v84_v10 }
  0xcf   :  { %v122_v12 = vpop.f32.mrf.mxu0 }
  0xd0   :  { %89 = vst.msk [vmem:[%s191_s3 + $0x8] sm:$0xff] %vm43_vm1, %v85_v11  ;;  %94 = vrot.lane.b32.xlu0 %v85_v11, %s130_s26 }
 0x13e   :  { %v93_v13 = vpop.permute.xlu0 %92 }
 0x13f   :  { %98 = vst.msk [vmem:[%s192_s4] sm:$0xff] %vm43_vm1, %v93_v13 }
 0x142   :  { %v95_v14 = vpop.permute.xlu0 %94 }
 0x143   :  { %99 = vst.msk [vmem:[%s192_s4 + $0x8] sm:$0xff] %vm43_vm1, %v95_v14 }

// kernel: music_transformer_forward.13
= control target key start
LH: loop header
LB: loop body
LE: loop exit
PB: predicated region body
PF: predicated region fallthrough
CT: control target
= control target key end

     0   :  { %v142_v0 = vmov 0.0   ;;  %vm143_vm0 = vmmov 0   ;;  %vm44_vm1 = vcmask 261120   ;;  %s144_s29 = smov 64   ;;  %s216_s1 = inlined_call_operand.vmem [shape: bf16[32,96], index: 1, kind: input, shape index: {}]   ;;  %s217_s0 = inlined_call_operand.vmem [shape: f32[16,32], index: 0, kind: input, shape index: {}]   ;;  %s218_s2 = inlined_call_operand.vmem [shape: f32[1,96], index: 2, kind: input, shape index: {}]   ;;  %s219_s3 = inlined_call_operand.vmem [shape: f32[16,32], index: 3, kind: output, shape index: {0}]   ;;  %s220_s5 = inlined_call_operand.vmem [shape: f32[16,32], index: 5, kind: output, shape index: {2}]   ;;  %s221_s4 = inlined_call_operand.vmem [shape: f32[16,32], index: 4, kind: output, shape index: {1}]  }
   0x1   :  { %128 = vmatprep.subr.bf16.mxu0 %v142_v0  ;;  %v140_v1 = vld [vmem:[%s216_s1 + $0x8] sm:$0xff]   ;;  %132 = vmatprep.mubr.msk.bf16.mxu0 %vm143_vm0, %v142_v0  ;;  %v141_v2 = vld [vmem:[%s216_s1] sm:$0xff]  }
   0x2   :  { %129 = vmatpush3.bf16.msra.mxu0 %v140_v1  ;;  %v18_v3 = vld [vmem:[%s217_s0] sm:$0xff]  ;;  %v19_v4 = vld [vmem:[%s217_s0 + $0x8] sm:$0xff]  ;;  %s145_s0 = smov 96  }
   0x3   :  { %130 = vmatprep.subr.bf16.mxu0 %v142_v0  ;;  %v20_v5 = vpack.c.bf16 %v19_v4, %v18_v3  ;;  %v121_v6 = vld [vmem:[%s218_s2] ss:$0 sm:$0xff] }
   0x6   :  { %131 = vmatpush3.bf16.msra.mxu0 %v141_v2 }
   0x9   :  { %133 = vmatmul.mubr.msk.bf16.vlgmr.msra.gmra.mxu0 %vm44_vm1, %v20_v5 }
  0xc9   :  { %v82_v7 = vpop.f32.mrf.mxu0 }
  0xca   :  { %v83_v8 = vadd.f32 %v121_v6, %v82_v7 }
  0xcb   :  { %v134_v9 = vpop.f32.mrf.mxu0 }
  0xcc   :  { %89 = vst.msk [vmem:[%s219_s3] sm:$0xff] %vm44_vm1, %v83_v8  ;;  %101 = vrot.lane.b32.xlu1 %v83_v8, %s144_s29  ;;  %93 = vrot.lane.b32.xlu0 %v83_v8, %s145_s0 }
  0xcd   :  { %v85_v10 = vpop.f32.mrf.mxu0 }
  0xce   :  { %v86_v11 = vadd.f32 %v121_v6, %v85_v10 }
  0xcf   :  { %v135_v12 = vpop.f32.mrf.mxu0 }
  0xd0   :  { %90 = vst.msk [vmem:[%s219_s3 + $0x8] sm:$0xff] %vm44_vm1, %v86_v11  ;;  %103 = vrot.lane.b32.xlu1 %v86_v11, %s144_s29  ;;  %95 = vrot.lane.b32.xlu0 %v86_v11, %s145_s0 }
 0x13e   :  { %v102_v13 = vpop.permute.xlu1 %101  ;;  %v94_v14 = vpop.permute.xlu0 %93 }
 0x13f   :  { %107 = vst.msk [vmem:[%s220_s5] sm:$0xff] %vm44_vm1, %v102_v13  ;;  %99 = vst.msk [vmem:[%s221_s4] sm:$0xff] %vm44_vm1, %v94_v14 }
 0x142   :  { %v104_v15 = vpop.permute.xlu1 %103  ;;  %v96_v16 = vpop.permute.xlu0 %95 }
 0x143   :  { %108 = vst.msk [vmem:[%s220_s5 + $0x8] sm:$0xff] %vm44_vm1, %v104_v15  ;;  %100 = vst.msk [vmem:[%s221_s4 + $0x8] sm:$0xff] %vm44_vm1, %v96_v16 }

// kernel: music_transformer_forward.14
= control target key start
LH: loop header
LB: loop body
LE: loop exit
PB: predicated region body
PF: predicated region fallthrough
CT: control target
= control target key end

     0   :  { %s1452_s27 = smov 0   ;;  %s1454_s28 = smov 0   ;;  %s1623_s0 = inlined_call_operand.vmem [shape: f32[2,8,32], index: 0, kind: input, shape index: {}]   ;;  %s1624_s1 = inlined_call_operand.vmem [shape: f32[2,8,32], index: 1, kind: input, shape index: {}]   ;;  %s1625_s2 = inlined_call_operand.vmem [shape: f32[2,8,32], index: 2, kind: input, shape index: {}]   ;;  %s1626_s3 = inlined_call_operand.vmem [shape: f32[2,8,32], index: 3, kind: input, shape index: {}]   ;;  %s1627_s4 = inlined_call_operand.vmem [shape: bf16[32,32], index: 4, kind: input, shape index: {}]   ;;  %s1628_s5 = inlined_call_operand.vmem [shape: f32[1,32], index: 5, kind: input, shape index: {}]   ;;  %s1629_s6 = inlined_call_operand.vmem [shape: f32[1,32], index: 6, kind: input, shape index: {}]   ;;  %s1630_s7 = inlined_call_operand.vmem [shape: f32[1,32], index: 7, kind: input, shape index: {}]   ;;  %s1631_s8 = inlined_call_operand.vmem [shape: f32[2,8,32], index: 8, kind: output, shape index: {}]  }
   0x1   :  { %s1456_s29 = smov 0  }
   0x2 LB: > { %s30_s30 = sadd.s32 1, %s1395_s28  ;;  %p1210_p0 = scmp.ge.s32.totalorder %s1399_s29, 1  ;;  %s1399_s29 = sphi %s1456_s29, %s18_s29   ;;  %s1395_s28 = sphi %s1454_s28, %s1633_s28   ;;  %s1391_s27 = sphi %s1452_s27, %s1632_s27  }
   0x3   : > { %p32_p1 = scmp.ge.s32.totalorder %s30_s30, 2  ;;  %p312_p2 = scmp.lt.s32.totalorder %s1399_s29, 3 }
   0x5   : > { %s1635_s30 = smov (%p32_p1, %s30_s30), 0  ;;  %p313_p3 = pnand %p1210_p0, %p312_p2 }
   0x6   : > { %p365_p4 = scmp.lt.s32.totalorder (!%p313_p3), %s1391_s27, 1  ;;  %s1403_s16 = smov (!%p313_p3), 120  }
   0x7   : > { %316 = sbr.rel (%p313_p3) target bundleno = 2376 (0x948), region = 52  ;;  %s1405_s20 = smov (!%p313_p3), 112  }
   0x8   : > { %s1406_s25 = smov (!%p313_p3), 104  }
   0xc   : > { %v1401_v0 = vmov 0.0   ;;  %vm1402_vm0 = vmmov 0   ;;  %s1637_s27 = smov (!%p365_p4, %s1391_s27), 1  ;;  %vm410_vm1 = vcmask 64512   ;;  %v399_v6 = vlaneseq  ;;  %v519_v49 = vld [vmem:[%s1627_s4] sm:$0xf] }
   0xd   : > { %1257 = vmatprep.subr.bf16.mxu0 %v1401_v0  ;;  %1259 = vmatprep.mubr.msk.bf16.mxu0 %vm1402_vm0, %v1401_v0  ;;  %s1476_s9 = sshll.u32 %s1637_s27, 3  ;;  %v1404_v10 = vmov -1e+09   ;;  %vm472_vm3 = vcmask 1043456   ;;  %v636_v51 = vld [vmem:[%s1627_s4 + $0x4] sm:$0xf] }
   0xe   : > { %1263 = vmatprep.subr.bf16.mxu1 %v1401_v0  ;;  %1265 = vmatprep.mubr.msk.bf16.mxu1 %vm1402_vm0, %v1401_v0  ;;  %s375_s12 = scalar_lea.vmem %s1624_s1, %s1476_s9  ;;  %s371_s15 = scalar_lea.vmem %s1623_s0, %s1476_s9  ;;  %v400_v7 = vshrl.u32 %v399_v6, 7  ;;  %v404_v8 = vand.u32 127, %v399_v6  ;;  %v687_v50 = vsel %vm472_vm3, %v519_v49, 0  ;;  %v641_v52 = vsel %vm472_vm3, %v636_v51, 0 }
   0xf   : > { %v396_v1 = vld [vmem:[%s375_s12] sm:$0xff]  ;;  %s379_s19 = scalar_lea.vmem %s1625_s2, %s1476_s9  ;;  %s386_s14 = scalar_lea.vmem %s1626_s3, %s1476_s9  ;;  %vm1061_vm4 = vcmask 261120  }
  0x10   : > { %v1482_v2 = vpack.c.bf16 %v396_v1, %v396_v1  ;;  %v395_v4 = vld [vmem:[%s371_s15] sm:$0xff]  ;;  %vm405_vm2 = vcmp.ge.s32.totalorder %v400_v7, %v404_v8  ;;  %s393_s23 = scalar_lea.vmem %s1631_s8, %s1476_s9 }
  0x11   : > { %v1491_v5 = vpack.c.bf16 %v395_v4, %v395_v4  ;;  %v1498_v11 = vsel %vm405_vm2, 0.0, %v1404_v10  ;;  %v397_v18 = vld [vmem:[%s379_s19] sm:$0xff] }
  0x12   : > { %v415_v3 = vsel %vm410_vm1, %v1482_v2, 0  ;;  %v1506_v19 = vpack.c.bf16 %v397_v18, %v397_v18 }
  0x13   : > { %1258 = vmatpush3.bf16.xpose.msra.mxu0 %v415_v3  ;;  %521 = vrot.lane.b32.xlu1 %v1491_v5, %s1403_s16 }
  0x14   : > { %1275 = vmatprep.subr.bf16.mxu0 %v1401_v0  ;;  %v474_v20 = vsel %vm472_vm3, %v1506_v19, 0 }
  0x15   : > { %1264 = vmatpush3.bf16.msra.mxu1 %v474_v20 }
  0x16   : > { %1269 = vmatprep.subr.bf16.mxu1 %v1401_v0 }
  0x1a   : > { %1260 = vmatmul.mubr.msk.bf16.vlgmr.msra.gmra.mxu0 %vm410_vm1, %v1491_v5 }
  0x1b   : > { %1277 = vmatprep.mubr.msk.bf16.mxu0 %vm1402_vm0, %v1401_v0 }
  0x85   : > { %v522_v28 = vpop.permute.xlu1 %521 }
  0xda   : > { %v451_v9 = vpop.f32.mrf.mxu0 }
  0xdb   : > { %v457_v12 = vmul.f32 0.35355338, %v451_v9 }
  0xdc   : > { %v1261_v13 = vpop.f32.mrf.mxu0 }
  0xdd   : > { %v458_v14 = vadd.f32 %v457_v12, %v1498_v11 }
  0xde   : > { %v454_v15 = vpop.f32.mrf.mxu0 }
  0xdf   : > { %v459_v16 = vsel %vm410_vm1, %v458_v14, -inf }
  0xe0   : > { %460 = vmax.xlane.f32.xlu0 %v459_v16  ;;  %v1262_v17 = vpop.f32.mrf.mxu0 }
  0xf6   : > { %524 = vrot.lane.b32.xlu0 %v1482_v2, %s1403_s16 }
  0xfa   : > { %585 = vrot.lane.b32.xlu0 %v1506_v19, %s1403_s16 }
 0x169   : > { %v461_v21 = vpop.xlane.xlu0 %460 }
 0x16a   : > { %v462_v22 = vsub.f32 %v458_v14, %v461_v21 }
 0x16c   : > { %v463_v23 = vmul.f32 1.442695, %v462_v22 }
 0x16d   : > { %v525_v24 = vpop.permute.xlu0 %524 }
 0x16e   : > { %1359 = vpow2.f32 %v463_v23  ;;  %v530_v26 = vsel %vm410_vm1, %v525_v24, 0 }
 0x171   : > { %v586_v40 = vpop.permute.xlu0 %585 }
 0x172   : > { %v591_v41 = vsel %vm472_vm3, %v586_v40, 0 }
 0x173   : > { %1276 = vmatpush3.bf16.msra.mxu0 %v591_v41 }
 0x174   : > { %1287 = vmatprep.subr.bf16.mxu0 %v1401_v0 }
 0x17b   : > { %v1360_v25 = vpop.eup %1359 }
 0x17c   : > { %v468_v27 = vpack.c.bf16 %v1360_v25, %v1360_v25  ;;  %v465_v48 = vsel %vm410_vm1, %v1360_v25, 0.0 }
 0x17e   : > { %1266 = vmatmul.mubr.msk.bf16.vlgmr.msra.gmra.mxu1 %vm410_vm1, %v468_v27 }
 0x17f   : > { %1270 = vmatpush3.bf16.xpose.msra.mxu1 %v530_v26  ;;  %1271 = vmatprep.mubr.msk.bf16.mxu1 %vm1402_vm0, %v1401_v0 }
 0x180   : > { %1281 = vmatprep.subr.bf16.mxu1 %v1401_v0 }
 0x186   : > { %1272 = vmatmul.mubr.msk.bf16.vlgmr.msra.gmra.mxu1 %vm410_vm1, %v522_v28 }
 0x187   : > { %1283 = vmatprep.mubr.msk.bf16.mxu1 %vm1402_vm0, %v1401_v0  ;;  %1282 = vmatpush3.bf16.msra.mxu1 %v641_v52 }
 0x188   : > { %1293 = vmatprep.subr.bf16.mxu1 %v1401_v0 }
 0x23e   : > { %v510_v29 = vpop.f32.mrf.mxu1 }
 0x240   : > { %v1267_v30 = vpop.f32.mrf.mxu1 }
 0x242   : > { %v513_v31 = vpop.f32.mrf.mxu1 }
 0x244   : > { %v1268_v32 = vpop.f32.mrf.mxu1 }
 0x246   : > { %v566_v33 = vpop.f32.mrf.mxu1 }
 0x247   : > { %v572_v34 = vmul.f32 0.35355338, %v566_v33 }
 0x248   : > { %v1273_v35 = vpop.f32.mrf.mxu1 }
 0x249   : > { %v573_v36 = vadd.f32 %v572_v34, %v1498_v11  ;;  %v842_v34 = vld [vmem:[%s1627_s4 + $0x8] sm:$0xf] }
 0x24a   : > { %v569_v37 = vpop.f32.mrf.mxu1  ;;  %v847_v35 = vsel %vm472_vm3, %v842_v34, 0 }
 0x24b   : > { %v574_v38 = vsel %vm410_vm1, %v573_v36, -inf }
 0x24c   : > { %575 = vmax.xlane.f32.xlu1 %v574_v38  ;;  %v1274_v39 = vpop.f32.mrf.mxu1 }
 0x25d   : > { %731 = vrot.lane.b32.xlu1 %v1482_v2, %s1405_s20 }
 0x261   : > { %729 = vrot.lane.b32.xlu1 %v1491_v5, %s1405_s20 }
 0x2d5   : > { %v576_v42 = vpop.xlane.xlu1 %575 }
 0x2d6   : > { %v577_v43 = vsub.f32 %v573_v36, %v576_v42 }
 0x2d8   : > { %v578_v44 = vmul.f32 1.442695, %v577_v43 }
 0x2d9   : > { %v732_v60 = vpop.permute.xlu1 %731 }
 0x2da   : > { %1361 = vpow2.f32 %v578_v44  ;;  %v737_v1 = vsel %vm410_vm1, %v732_v60, 0 }
 0x2dd   : > { %v730_v6 = vpop.permute.xlu1 %729 }
 0x2e7   : > { %v1362_v45 = vpop.eup %1361 }
 0x2e8   : > { %v580_v46 = vsel %vm410_vm1, %v1362_v45, 0.0  ;;  %v583_v47 = vpack.c.bf16 %v1362_v45, %v1362_v45 }
 0x2e9   : > { %581 = vadd.xlane.f32.xlu0 %v580_v46 }
 0x2ea   : > { %1278 = vmatmul.mubr.msk.bf16.vlgmr.msra.gmra.mxu0 %vm410_vm1, %v583_v47 }
 0x2eb   : > { %1289 = vmatprep.mubr.msk.bf16.mxu0 %vm1402_vm0, %v1401_v0  ;;  %1288 = vmatpush3.bf16.msra.mxu0 %v687_v50 }
 0x2ec   : > { %1299 = vmatprep.subr.bf16.mxu0 %v1401_v0 }
 0x2ed   : > { %466 = vadd.xlane.f32.xlu0 %v465_v48 }
 0x303   : > { %791 = vrot.lane.b32.xlu0 %v1506_v19, %s1405_s20 }
 0x307   : > { %892 = vrot.lane.b32.xlu0 %v1482_v2, %s1406_s25 }
 0x30b   : > { %890 = vrot.lane.b32.xlu0 %v1491_v5, %s1406_s25 }
 0x372   : > { %v582_v53 = vpop.xlane.xlu0 %581 }
 0x376   : > { %v467_v54 = vpop.xlane.xlu0 %466 }
 0x377   : > { %1363 = vrcp.f32 %v467_v54 }
 0x378   : > { %1365 = vrcp.f32 %v582_v53 }
 0x37a   : > { %v792_v23 = vpop.permute.xlu0 %791 }
 0x37b   : > { %v797_v24 = vsel %vm472_vm3, %v792_v23, 0 }
 0x37e   : > { %v893_v28 = vpop.permute.xlu0 %892 }
 0x37f   : > { %v898_v30 = vsel %vm410_vm1, %v893_v28, 0 }
 0x382   : > { %v891_v33 = vpop.permute.xlu0 %890 }
 0x384   : > { %v1364_v55 = vpop.eup %1363 }
 0x385   : > { %v517_v56 = vmul.f32 %v1364_v55, %v510_v29  ;;  %v1366_v58 = vpop.eup %1365 }
 0x387   : > { %v518_v57 = vpack.c.bf16 %v517_v56, %v517_v56 }
 0x389   : > { %1290 = vmatmul.mubr.msk.bf16.vlgmr.msra.gmra.mxu0 %vm410_vm1, %v518_v57  ;;  %v1003_v57 = vld [vmem:[%s1627_s4 + $0xc] sm:$0xf] }
 0x38a   : > { %1301 = vmatprep.mubr.msk.bf16.mxu0 %vm1402_vm0, %v1401_v0  ;;  %1300 = vmatpush3.bf16.msra.mxu0 %v797_v24 }
 0x38b   : > { %1311 = vmatprep.subr.bf16.mxu0 %v1401_v0 }
 0x3aa   : > { %v627_v59 = vpop.f32.mrf.mxu0 }
 0x3ab   : > { %v634_v61 = vmul.f32 %v1366_v58, %v627_v59 }
 0x3ac   : > { %v1279_v62 = vpop.f32.mrf.mxu0 }
 0x3ad   : > { %v635_v63 = vpack.c.bf16 %v634_v61, %v634_v61 }
 0x3ae   : > { %v630_v3 = vpop.f32.mrf.mxu0 }
 0x3af   : > { %1284 = vmatmul.mubr.msk.bf16.vlgmr.msra.gmra.mxu1 %vm410_vm1, %v635_v63 }
 0x3b0   : > { %1294 = vmatpush3.bf16.xpose.msra.mxu1 %v737_v1  ;;  %v1280_v4 = vpop.f32.mrf.mxu0  ;;  %1295 = vmatprep.mubr.msk.bf16.mxu1 %vm1402_vm0, %v1401_v0 }
 0x3b1   : > { %1305 = vmatprep.subr.bf16.mxu1 %v1401_v0 }
 0x3b7   : > { %1296 = vmatmul.mubr.msk.bf16.vlgmr.msra.gmra.mxu1 %vm410_vm1, %v730_v6 }
 0x3b8   : > { %1307 = vmatprep.mubr.msk.bf16.mxu1 %vm1402_vm0, %v1401_v0  ;;  %1306 = vmatpush3.bf16.msra.mxu1 %v847_v35 }
 0x3b9   : > { %1317 = vmatprep.subr.bf16.mxu1 %v1401_v0 }
 0x449   : > { %v723_v7 = vpop.f32.mrf.mxu0 }
 0x44b   : > { %v1291_v8 = vpop.f32.mrf.mxu0 }
 0x44d   : > { %v726_v9 = vpop.f32.mrf.mxu0 }
 0x44f   : > { %v1292_v10 = vpop.f32.mrf.mxu0 }
 0x46f   : > { %v677_v12 = vpop.f32.mrf.mxu1 }
 0x470   : > { %v1558_v13 = vadd.f32 %v723_v7, %v677_v12  ;;  %v1228_v12 = vld [vmem:[%s1628_s5] ss:$0 sm:$0xff] }
 0x471   : > { %v1285_v14 = vpop.f32.mrf.mxu1 }
 0x473   : > { %v680_v15 = vpop.f32.mrf.mxu1 }
 0x474   : > { %v1059_v15 = vld [vmem:[%s386_s14] sm:$0xff] }
 0x475   : > { %v1286_v16 = vpop.f32.mrf.mxu1 }
 0x477   : > { %v773_v17 = vpop.f32.mrf.mxu1 }
 0x478   : > { %v779_v18 = vmul.f32 0.35355338, %v773_v17 }
 0x479   : > { %v1297_v20 = vpop.f32.mrf.mxu1 }
 0x47a   : > { %v780_v21 = vadd.f32 %v779_v18, %v1498_v11 }
 0x47b   : > { %v776_v22 = vpop.f32.mrf.mxu1 }
 0x47c   : > { %v781_v2 = vsel %vm410_vm1, %v780_v21, -inf }
 0x47d   : > { %782 = vmax.xlane.f32.xlu1 %v781_v2  ;;  %v1298_v5 = vpop.f32.mrf.mxu1 }
 0x506   : > { %v783_v25 = vpop.xlane.xlu1 %782 }
 0x507   : > { %v784_v26 = vsub.f32 %v780_v21, %v783_v25 }
 0x509   : > { %v785_v27 = vmul.f32 1.442695, %v784_v26 }
 0x50b   : > { %1367 = vpow2.f32 %v785_v27 }
 0x518   : > { %v1368_v29 = vpop.eup %1367 }
 0x519   : > { %v787_v31 = vsel %vm410_vm1, %v1368_v29, 0.0  ;;  %v790_v32 = vpack.c.bf16 %v1368_v29, %v1368_v29  ;;  %v1229_v29 = vld [vmem:[%s1629_s6] ss:$0 sm:$0xff] }
 0x51a   : > { %788 = vadd.xlane.f32.xlu0 %v787_v31  ;;  %v1230_v31 = vld [vmem:[%s1630_s7] ss:$0 sm:$0xff] }
 0x51b   : > { %1302 = vmatmul.mubr.msk.bf16.vlgmr.msra.gmra.mxu0 %vm410_vm1, %v790_v32 }
 0x51c   : > { %1312 = vmatpush3.bf16.xpose.msra.mxu0 %v898_v30  ;;  %1313 = vmatprep.mubr.msk.bf16.mxu0 %vm1402_vm0, %v1401_v0 }
 0x51d   : > { %1323 = vmatprep.subr.bf16.mxu0 %v1401_v0 }
 0x523   : > { %1314 = vmatmul.mubr.msk.bf16.vlgmr.msra.gmra.mxu0 %vm410_vm1, %v891_v33 }
 0x524   : > { %1325 = vmatprep.mubr.msk.bf16.mxu0 %vm1402_vm0, %v1401_v0 }
 0x5a3   : > { %v789_v36 = vpop.xlane.xlu0 %788 }
 0x5a4   : > { %1369 = vrcp.f32 %v789_v36 }
 0x5b1   : > { %v1370_v37 = vpop.eup %1369 }
 0x5db   : > { %v833_v38 = vpop.f32.mrf.mxu0 }
 0x5dc   : > { %v840_v39 = vmul.f32 %v1370_v37, %v833_v38 }
 0x5dd   : > { %v1303_v40 = vpop.f32.mrf.mxu0 }
 0x5de   : > { %v841_v41 = vpack.c.bf16 %v840_v39, %v840_v39 }
 0x5df   : > { %v836_v42 = vpop.f32.mrf.mxu0 }
 0x5e0   : > { %1308 = vmatmul.mubr.msk.bf16.vlgmr.msra.gmra.mxu1 %vm410_vm1, %v841_v41 }
 0x5e1   : > { %v1304_v43 = vpop.f32.mrf.mxu0  ;;  %1319 = vmatprep.mubr.msk.bf16.mxu1 %vm1402_vm0, %v1401_v0 }
 0x5e3   : > { %v934_v44 = vpop.f32.mrf.mxu0 }
 0x5e4   : > { %v940_v45 = vmul.f32 0.35355338, %v934_v44 }
 0x5e5   : > { %v1315_v46 = vpop.f32.mrf.mxu0 }
 0x5e6   : > { %v941_v47 = vadd.f32 %v940_v45, %v1498_v11 }
 0x5e7   : > { %v937_v48 = vpop.f32.mrf.mxu0 }
 0x5e8   : > { %v942_v49 = vsel %vm410_vm1, %v941_v47, -inf }
 0x5e9   : > { %943 = vmax.xlane.f32.xlu1 %v942_v49  ;;  %v1316_v50 = vpop.f32.mrf.mxu0 }
 0x5fa   : > { %952 = vrot.lane.b32.xlu1 %v1506_v19, %s1406_s25  ;;  %v1008_v19 = vsel %vm472_vm3, %v1003_v57, 0 }
 0x5fb   : > { %1324 = vmatpush3.bf16.msra.mxu0 %v1008_v19 }
 0x672   : > { %v944_v51 = vpop.xlane.xlu1 %943 }
 0x673   : > { %v945_v52 = vsub.f32 %v941_v47, %v944_v51 }
 0x675   : > { %v946_v53 = vmul.f32 1.442695, %v945_v52 }
 0x676   : > { %v953_v54 = vpop.permute.xlu1 %952 }
 0x677   : > { %1371 = vpow2.f32 %v946_v53  ;;  %v958_v0 = vsel %vm472_vm3, %v953_v54, 0 }
 0x678   : > { %1318 = vmatpush3.bf16.msra.mxu1 %v958_v0 }
 0x684   : > { %v1372_v55 = vpop.eup %1371 }
 0x685   : > { %v948_v56 = vsel %vm410_vm1, %v1372_v55, 0.0  ;;  %v951_v11 = vpack.c.bf16 %v1372_v55, %v1372_v55 }
 0x686   : > { %949 = vadd.xlane.f32.xlu1 %v948_v56 }
 0x687   : > { %1320 = vmatmul.mubr.msk.bf16.vlgmr.msra.gmra.mxu1 %vm410_vm1, %v951_v11 }
 0x6a0   : > { %v883_v58 = vpop.f32.mrf.mxu1 }
 0x6a1   : > { %v889_v59 = vadd.f32 %v883_v58, %v1558_v13 }
 0x6a2   : > { %v1309_v60 = vpop.f32.mrf.mxu1 }
 0x6a4   : > { %v886_v61 = vpop.f32.mrf.mxu1 }
 0x6a6   : > { %v1310_v62 = vpop.f32.mrf.mxu1 }
 0x70f   : > { %v950_v63 = vpop.xlane.xlu1 %949 }
 0x710   : > { %1373 = vrcp.f32 %v950_v63 }
 0x71d   : > { %v1374_v1 = vpop.eup %1373 }
 0x747   : > { %v994_v3 = vpop.f32.mrf.mxu1 }
 0x748   : > { %v1001_v4 = vmul.f32 %v1374_v1, %v994_v3 }
 0x749   : > { %v1321_v6 = vpop.f32.mrf.mxu1 }
 0x74a   : > { %v1002_v7 = vpack.c.bf16 %v1001_v4, %v1001_v4 }
 0x74b   : > { %v997_v8 = vpop.f32.mrf.mxu1 }
 0x74c   : > { %1326 = vmatmul.mubr.msk.bf16.vlgmr.msra.gmra.mxu0 %vm410_vm1, %v1002_v7 }
 0x74d   : > { %v1322_v9 = vpop.f32.mrf.mxu1 }
 0x80c   : > { %v1044_v10 = vpop.f32.mrf.mxu0 }
 0x80d   : > { %v1050_v13 = vadd.f32 %v1044_v10, %v889_v59 }
 0x80e   : > { %v1327_v14 = vpop.f32.mrf.mxu0 }
 0x80f   : > { %v1058_v16 = vadd.f32 %v1228_v12, %v1050_v13 }
 0x810   : > { %v1047_v17 = vpop.f32.mrf.mxu0 }
 0x811   : > { %v1060_v18 = vadd.f32 %v1059_v15, %v1058_v16 }
 0x812   : > { %v1328_v20 = vpop.f32.mrf.mxu0 }
 0x813   : > { %v1062_v21 = vsel %vm1061_vm4, %v1060_v18, 0.0 }
 0x814   : > { %1063 = vadd.xlane.f32.xlu0 %v1062_v21 }
 0x89d   : > { %v1064_v22 = vpop.xlane.xlu0 %1063 }
 0x89e   : > { %v1066_v2 = vmul.f32 0.03125, %v1064_v22 }
 0x8a0   : > { %v1067_v5 = vsub.f32 %v1060_v18, %v1066_v2 }
 0x8a2   : > { %v1068_v23 = vmul.f32 %v1067_v5, %v1067_v5 }
 0x8a4   : > { %v1069_v24 = vsel %vm1061_vm4, %v1068_v23, 0.0 }
 0x8a5   : > { %1070 = vadd.xlane.f32.xlu0 %v1069_v24 }
 0x92e   : > { %v1071_v25 = vpop.xlane.xlu0 %1070 }
 0x92f   : > { %v1072_v26 = vmul.f32 0.03125, %v1071_v25 }
 0x931   : > { %v1073_v27 = vadd.f32 1e-05, %v1072_v26 }
 0x933   : > { %1375 = vrsqrt.f32 %v1073_v27 }
 0x940   : > { %v1376_v28 = vpop.eup %1375 }
 0x941   : > { %v1075_v30 = vmul.f32 %v1376_v28, %v1067_v5 }
 0x943   : > { %v1083_v32 = vmul.f32 %v1229_v29, %v1075_v30 }
 0x945   : > { %v1091_v33 = vadd.f32 %v1230_v31, %v1083_v32 }
 0x947   : > { %1092 = vst.msk [vmem:[%s393_s23] sm:$0xff] %vm1061_vm4, %v1091_v33 }
 0x948 PF: > { %s18_s29 = sadd.s32 1, %s1399_s29   ;;  %s1632_s27 = smov %s1395_s28 }
 0x949   : > { %p15_p5 = scmp.ge.s32.totalorder %s18_s29, 4   ;;  %s1633_s28 = smov %s1635_s30 }
 0x94b   :  { %17 = sbr.rel (!%p15_p5) target bundleno = 2 (0x2), region = 91 }

// kernel: music_transformer_forward.25
= control target key start
LH: loop header
LB: loop body
LE: loop exit
PB: predicated region body
PF: predicated region fallthrough
CT: control target
= control target key end

     0   :  { %v149_v1 = vmov 0.0   ;;  %vm150_vm0 = vmmov 0   ;;  %s192_s0 = inlined_call_operand.vmem [shape: f32[16,32], index: 0, kind: input, shape index: {}]   ;;  %s193_s1 = inlined_call_operand.vmem [shape: bf16[32,128], index: 1, kind: input, shape index: {}]   ;;  %s194_s2 = inlined_call_operand.vmem [shape: f32[1,128], index: 2, kind: input, shape index: {}]   ;;  %s195_s3 = inlined_call_operand.hbm [shape: f32[16,128], index: 3, kind: output, shape index: {}]  }
   0x1   :  { %v125_v0 = vld [vmem:[%s193_s1 + $0x8] sm:$0xff]   ;;  %112 = vmatprep.subr.bf16.mxu0 %v149_v1  ;;  %v126_v2 = vld [vmem:[%s193_s1] sm:$0xff]   ;;  %116 = vmatprep.mubr.msk.bf16.mxu0 %vm150_vm0, %v149_v1 }
   0x2   :  { %113 = vmatpush3.bf16.msra.mxu0 %v125_v0  ;;  %v16_v3 = vld [vmem:[%s192_s0] sm:$0xff]  ;;  %v17_v4 = vld [vmem:[%s192_s0 + $0x8] sm:$0xff] }
   0x3   :  { %114 = vmatprep.subr.bf16.mxu0 %v149_v1 }
   0x4   :  { %8 = vsyncpa [#allocation3], 0  ;;  %v18_v5 = vpack.c.bf16 %v17_v4, %v16_v3  ;;  %vm42_vm1 = vcmask 261120   ;;  %v105_v6 = vld [vmem:[%s194_s2] ss:$0 sm:$0xff]  ;;  %s151_s1 = smov [#allocation2]  }
   0x5   :  { %s94_s22 = sshll.u32 %s151_s1, 4  ;;  %s95_s22 = int_to_ptr.vmem [resolvable:$true] %s94_s22 }
   0x6   :  { %115 = vmatpush3.bf16.msra.mxu0 %v126_v2  ;;  %s127_s0 = scalar_lea.vmem %s95_s22, 256  ;;  %p132_p1 = scmp.lt.s32.totalorder %s95_s22, %s95_s22 }
   0x7   :  { %p128_p0 = scmp.ne.s32.totalorder %s95_s22, %s127_s0  ;;  %p133_p2 = scmp.lt.s32.totalorder %s127_s0, %s127_s0 }
   0x9   :  { %117 = vmatmul.mubr.msk.bf16.vlgmr.msra.gmra.mxu0 %vm42_vm1, %v18_v5  ;;  %p134_p3 = por %p133_p2, %p132_p1 }
   0xb   :  { %p135_p4 = pnand %p134_p3, %p128_p0 }
  0xc9   :  { %v80_v7 = vpop.f32.mrf.mxu0 }
  0xca   :  { %v81_v8 = vadd.f32 %v105_v6, %v80_v7 }
  0xcb   :  { %v118_v9 = vpop.f32.mrf.mxu0 }
  0xcc   :  { %87 = vst [vmem:[#allocation2] sm:$0xff] %v81_v8 }
  0xcd   :  { %v83_v10 = vpop.f32.mrf.mxu0 }
  0xce   :  { %v84_v11 = vadd.f32 %v105_v6, %v83_v10 }
  0xcf   :  { %v119_v12 = vpop.f32.mrf.mxu0 }
  0xd0   :  { %88 = vst [vmem:[#allocation2 + $0x8] sm:$0xff] %v84_v11 }
  0xd1   :  { %138 = shalt.err (!%p135_p4)
}
  0xd2   :  { %s152_s23 = smov 128   ;;  %s153_s2 = smov 8  }
  0xd3   :  { %100 = dma.vmem_to_hbm [thread:$0]  %s95_s22, 256, %s195_s3, [#allocation3], %s152_s23, %s152_s23, %s153_s2  }
  0xd4   :  { %147 = dma.done.wait [#allocation3], 256  }
  0xd5   :  { %148 = vsyncadd [#allocation3], 4294967040 }
  0xd6   :  { %104 = vsyncpa [#allocation3], 1 }

// kernel: music_transformer_forward.18
= control target key start
LH: loop header
LB: loop body
LE: loop exit
PB: predicated region body
PF: predicated region fallthrough
CT: control target
= control target key end

     0   :  { %v290_v0 = vmov 0.0   ;;  %vm291_vm0 = vmmov 0   ;;  %vm53_vm1 = vcmask 261120   ;;  %vm140_vm2 = vcmask 523264   ;;  %s381_s1 = inlined_call_operand.vmem [shape: bf16[32,64], index: 1, kind: input, shape index: {}]   ;;  %s382_s0 = inlined_call_operand.vmem [shape: f32[16,32], index: 0, kind: input, shape index: {}]   ;;  %s383_s3 = inlined_call_operand.vmem [shape: bf16[64,32], index: 3, kind: input, shape index: {}]   ;;  %s384_s2 = inlined_call_operand.vmem [shape: f32[1,64], index: 2, kind: input, shape index: {}]   ;;  %s385_s4 = inlined_call_operand.vmem [shape: f32[1,32], index: 4, kind: input, shape index: {}]   ;;  %s386_s5 = inlined_call_operand.vmem [shape: f32[1,32], index: 5, kind: input, shape index: {}]   ;;  %s387_s6 = inlined_call_operand.vmem [shape: f32[1,32], index: 6, kind: input, shape index: {}]   ;;  %s388_s7 = inlined_call_operand.vmem [shape: f32[16,32], index: 7, kind: output, shape index: {}]  }
   0x1   :  { %258 = vmatprep.subr.bf16.mxu0 %v290_v0  ;;  %v280_v1 = vld [vmem:[%s381_s1 + $0x8] sm:$0xff]   ;;  %262 = vmatprep.mubr.msk.bf16.mxu0 %vm291_vm0, %v290_v0  ;;  %v281_v2 = vld [vmem:[%s381_s1] sm:$0xff]   ;;  %v282_v5 = vld [vmem:[%s383_s3 + $0x18] sm:$0xff]  }
   0x2   :  { %266 = vmatprep.subr.bf16.mxu1 %v290_v0  ;;  %274 = vmatprep.mubr.msk.bf16.mxu1 %vm291_vm0, %v290_v0  ;;  %v27_v3 = vld [vmem:[%s382_s0] sm:$0xff]  ;;  %v28_v4 = vld [vmem:[%s382_s0 + $0x8] sm:$0xff]  ;;  %v283_v7 = vld [vmem:[%s383_s3 + $0x10] sm:$0xff]  }
   0x3   :  { %259 = vmatpush3.bf16.msra.mxu0 %v280_v1  ;;  %v29_v6 = vpack.c.bf16 %v28_v4, %v27_v3  ;;  %267 = vmatpush3.bf16.msra.mxu1 %v282_v5  ;;  %v284_v8 = vld [vmem:[%s383_s3 + $0x8] sm:$0xff]   ;;  %v285_v9 = vld [vmem:[%s383_s3] sm:$0xff]  }
   0x4   :  { %260 = vmatprep.subr.bf16.mxu0 %v290_v0  ;;  %268 = vmatprep.subr.bf16.mxu1 %v290_v0  ;;  %v238_v10 = vld [vmem:[%s384_s2] ss:$0 sm:$0xff] }
   0x5   :  { %v242_v20 = vld [vmem:[%s385_s4] ss:$0 sm:$0xff] }
   0x6   :  { %v248_v48 = vld [vmem:[%s386_s5] ss:$0 sm:$0xff] }
   0x7   :  { %261 = vmatpush3.bf16.msra.mxu0 %v281_v2  ;;  %269 = vmatpush3.bf16.msra.mxu1 %v283_v7  ;;  %v249_v50 = vld [vmem:[%s387_s6] ss:$0 sm:$0xff] }
   0x8   :  { %270 = vmatprep.subr.bf16.mxu1 %v290_v0 }
   0xa   :  { %263 = vmatmul.mubr.msk.bf16.vlgmr.msra.gmra.mxu0 %vm53_vm1, %v29_v6 }
   0xb   :  { %271 = vmatpush3.bf16.msra.mxu1 %v284_v8 }
   0xc   :  { %272 = vmatprep.subr.bf16.mxu1 %v290_v0 }
   0xf   :  { %273 = vmatpush3.bf16.msra.mxu1 %v285_v9 }
  0xca   :  { %v91_v11 = vpop.f32.mrf.mxu0 }
  0xcb   :  { %v92_v13 = vadd.f32 %v238_v10, %v91_v11 }
  0xcc   :  { %v264_v12 = vpop.f32.mrf.mxu0 }
  0xcd   :  { %v98_v17 = vmax.f32 %v92_v13, 0.0 }
  0xce   :  { %v94_v14 = vpop.f32.mrf.mxu0 }
  0xcf   :  { %v95_v15 = vadd.f32 %v238_v10, %v94_v14 }
  0xd0   :  { %v265_v16 = vpop.f32.mrf.mxu0 }
  0xd1   :  { %v99_v18 = vmax.f32 %v95_v15, 0.0 }
  0xd3   :  { %v100_v19 = vpack.c.bf16 %v99_v18, %v98_v17 }
  0xd5   :  { %275 = vmatmul.mubr.msk.bf16.vlgmr.msra.gmra.mxu1 %vm140_vm2, %v100_v19 }
 0x195   :  { %v178_v21 = vpop.f32.mrf.mxu1 }
 0x196   :  { %v179_v22 = vadd.f32 %v242_v20, %v178_v21 }
 0x197   :  { %v276_v23 = vpop.f32.mrf.mxu1 }
 0x198   :  { %v185_v24 = vadd.f32 %v179_v22, %v27_v3 }
 0x199   :  { %v181_v25 = vpop.f32.mrf.mxu1 }
 0x19a   :  { %v182_v26 = vadd.f32 %v242_v20, %v181_v25  ;;  %v187_v27 = vsel %vm53_vm1, %v185_v24, 0.0 }
 0x19b   :  { %188 = vadd.xlane.f32.xlu0 %v187_v27  ;;  %v277_v28 = vpop.f32.mrf.mxu1 }
 0x19c   :  { %v186_v29 = vadd.f32 %v182_v26, %v28_v4 }
 0x19e   :  { %v190_v30 = vsel %vm53_vm1, %v186_v29, 0.0 }
 0x19f   :  { %191 = vadd.xlane.f32.xlu0 %v190_v30 }
 0x224   :  { %v189_v31 = vpop.xlane.xlu0 %188 }
 0x225   :  { %v194_v32 = vmul.f32 0.03125, %v189_v31 }
 0x227   :  { %v196_v33 = vsub.f32 %v185_v24, %v194_v32 }
 0x228   :  { %v192_v34 = vpop.xlane.xlu0 %191 }
 0x229   :  { %v195_v35 = vmul.f32 0.03125, %v192_v34  ;;  %v198_v36 = vmul.f32 %v196_v33, %v196_v33 }
 0x22b   :  { %v197_v37 = vsub.f32 %v186_v29, %v195_v35  ;;  %v200_v38 = vsel %vm53_vm1, %v198_v36, 0.0 }
 0x22c   :  { %201 = vadd.xlane.f32.xlu1 %v200_v38 }
 0x22d   :  { %v199_v39 = vmul.f32 %v197_v37, %v197_v37 }
 0x22f   :  { %v203_v40 = vsel %vm53_vm1, %v199_v39, 0.0 }
 0x230   :  { %204 = vadd.xlane.f32.xlu1 %v203_v40 }
 0x2b5   :  { %v202_v41 = vpop.xlane.xlu1 %201 }
 0x2b6   :  { %v206_v42 = vmul.f32 0.03125, %v202_v41 }
 0x2b8   :  { %v208_v43 = vadd.f32 1e-05, %v206_v42 }
 0x2b9   :  { %v205_v44 = vpop.xlane.xlu1 %204 }
 0x2ba   :  { %286 = vrsqrt.f32 %v208_v43  ;;  %v207_v45 = vmul.f32 0.03125, %v205_v44 }
 0x2bc   :  { %v209_v46 = vadd.f32 1e-05, %v207_v45 }
 0x2be   :  { %288 = vrsqrt.f32 %v209_v46 }
 0x2c7   :  { %v287_v47 = vpop.eup %286 }
 0x2c8   :  { %v212_v49 = vmul.f32 %v287_v47, %v196_v33 }
 0x2ca   :  { %v221_v51 = vmul.f32 %v248_v48, %v212_v49 }
 0x2cb   :  { %v289_v52 = vpop.eup %288 }
 0x2cc   :  { %v230_v53 = vadd.f32 %v249_v50, %v221_v51  ;;  %v213_v54 = vmul.f32 %v289_v52, %v197_v37 }
 0x2ce   :  { %232 = vst.msk [vmem:[%s388_s7] sm:$0xff] %vm53_vm1, %v230_v53  ;;  %v222_v55 = vmul.f32 %v248_v48, %v213_v54 }
 0x2d0   :  { %v231_v56 = vadd.f32 %v249_v50, %v222_v55 }
 0x2d2   :  { %233 = vst.msk [vmem:[%s388_s7 + $0x8] sm:$0xff] %vm53_vm1, %v231_v56 }

// kernel: music_transformer_forward.17
= control target key start
LH: loop header
LB: loop body
LE: loop exit
PB: predicated region body
PF: predicated region fallthrough
CT: control target
= control target key end

     0   :  { %s1437_s27 = smov 0   ;;  %s1439_s28 = smov 0   ;;  %s1602_s0 = inlined_call_operand.vmem [shape: f32[2,8,32], index: 0, kind: input, shape index: {}]   ;;  %s1603_s1 = inlined_call_operand.vmem [shape: f32[2,8,32], index: 1, kind: input, shape index: {}]   ;;  %s1604_s2 = inlined_call_operand.vmem [shape: f32[2,8,32], index: 2, kind: input, shape index: {}]   ;;  %s1605_s3 = inlined_call_operand.vmem [shape: f32[2,8,32], index: 3, kind: input, shape index: {}]   ;;  %s1606_s4 = inlined_call_operand.vmem [shape: bf16[32,32], index: 4, kind: input, shape index: {}]   ;;  %s1607_s5 = inlined_call_operand.vmem [shape: f32[1,32], index: 5, kind: input, shape index: {}]   ;;  %s1608_s6 = inlined_call_operand.vmem [shape: f32[1,32], index: 6, kind: input, shape index: {}]   ;;  %s1609_s7 = inlined_call_operand.vmem [shape: f32[1,32], index: 7, kind: input, shape index: {}]   ;;  %s1610_s8 = inlined_call_operand.vmem [shape: f32[2,8,32], index: 8, kind: output, shape index: {}]  }
   0x1   :  { %s1441_s29 = smov 0  }
   0x2 LB: > { %s30_s30 = sadd.s32 1, %s1381_s28  ;;  %p1197_p0 = scmp.ge.s32.totalorder %s1385_s29, 1  ;;  %s1385_s29 = sphi %s1441_s29, %s18_s29   ;;  %s1381_s28 = sphi %s1439_s28, %s1612_s28   ;;  %s1377_s27 = sphi %s1437_s27, %s1611_s27  }
   0x3   : > { %p32_p1 = scmp.ge.s32.totalorder %s30_s30, 2  ;;  %p312_p2 = scmp.lt.s32.totalorder %s1385_s29, 3 }
   0x5   : > { %s1614_s30 = smov (%p32_p1, %s30_s30), 0  ;;  %p313_p3 = pnand %p1197_p0, %p312_p2 }
   0x6   : > { %p365_p4 = scmp.lt.s32.totalorder (!%p313_p3), %s1377_s27, 1  ;;  %s1389_s16 = smov (!%p313_p3), 120  }
   0x7   : > { %316 = sbr.rel (%p313_p3) target bundleno = 2368 (0x940), region = 52  ;;  %s1390_s20 = smov (!%p313_p3), 112  }
   0x8   : > { %s1391_s25 = smov (!%p313_p3), 104  }
   0xc   : > { %v1387_v0 = vmov 0.0   ;;  %vm1388_vm0 = vmmov 0   ;;  %s1616_s27 = smov (!%p365_p4, %s1377_s27), 1  ;;  %vm401_vm1 = vcmask 64512   ;;  %vm462_vm2 = vcmask 1043456  }
   0xd   : > { %1244 = vmatprep.subr.bf16.mxu0 %v1387_v0  ;;  %1246 = vmatprep.mubr.msk.bf16.mxu0 %vm1388_vm0, %v1387_v0  ;;  %s1461_s9 = sshll.u32 %s1616_s27, 3  ;;  %v509_v42 = vld [vmem:[%s1606_s4] sm:$0xf]  ;;  %v625_v44 = vld [vmem:[%s1606_s4 + $0x4] sm:$0xf]  ;;  %vm1048_vm3 = vcmask 261120  }
   0xe   : > { %1250 = vmatprep.subr.bf16.mxu1 %v1387_v0  ;;  %1252 = vmatprep.mubr.msk.bf16.mxu1 %vm1388_vm0, %v1387_v0  ;;  %s375_s12 = scalar_lea.vmem %s1603_s1, %s1461_s9  ;;  %s371_s15 = scalar_lea.vmem %s1602_s0, %s1461_s9  ;;  %v676_v43 = vsel %vm462_vm2, %v509_v42, 0  ;;  %v630_v45 = vsel %vm462_vm2, %v625_v44, 0 }
   0xf   : > { %v396_v1 = vld [vmem:[%s375_s12] sm:$0xff]  ;;  %s379_s19 = scalar_lea.vmem %s1604_s2, %s1461_s9  ;;  %s386_s14 = scalar_lea.vmem %s1605_s3, %s1461_s9 }
  0x10   : > { %v1467_v2 = vpack.c.bf16 %v396_v1, %v396_v1  ;;  %v395_v4 = vld [vmem:[%s371_s15] sm:$0xff]  ;;  %s393_s23 = scalar_lea.vmem %s1610_s8, %s1461_s9 }
  0x11   : > { %v1476_v5 = vpack.c.bf16 %v395_v4, %v395_v4  ;;  %v397_v12 = vld [vmem:[%s379_s19] sm:$0xff] }
  0x12   : > { %v406_v3 = vsel %vm401_vm1, %v1467_v2, 0  ;;  %v1488_v13 = vpack.c.bf16 %v397_v12, %v397_v12 }
  0x13   : > { %1245 = vmatpush3.bf16.xpose.msra.mxu0 %v406_v3  ;;  %511 = vrot.lane.b32.xlu1 %v1476_v5, %s1389_s16 }
  0x14   : > { %1262 = vmatprep.subr.bf16.mxu0 %v1387_v0  ;;  %v464_v14 = vsel %vm462_vm2, %v1488_v13, 0 }
  0x15   : > { %1251 = vmatpush3.bf16.msra.mxu1 %v464_v14 }
  0x16   : > { %1256 = vmatprep.subr.bf16.mxu1 %v1387_v0 }
  0x1a   : > { %1247 = vmatmul.mubr.msk.bf16.vlgmr.msra.gmra.mxu0 %vm401_vm1, %v1476_v5 }
  0x1b   : > { %1264 = vmatprep.mubr.msk.bf16.mxu0 %vm1388_vm0, %v1387_v0 }
  0x85   : > { %v512_v22 = vpop.permute.xlu1 %511 }
  0xda   : > { %v442_v6 = vpop.f32.mrf.mxu0 }
  0xdb   : > { %v448_v7 = vmul.f32 0.35355338, %v442_v6 }
  0xdc   : > { %v1248_v8 = vpop.f32.mrf.mxu0 }
  0xdd   : > { %v449_v9 = vsel %vm401_vm1, %v448_v7, -inf }
  0xde   : > { %450 = vmax.xlane.f32.xlu0 %v449_v9  ;;  %v445_v10 = vpop.f32.mrf.mxu0 }
  0xe0   : > { %v1249_v11 = vpop.f32.mrf.mxu0 }
  0xf4   : > { %514 = vrot.lane.b32.xlu0 %v1467_v2, %s1389_s16 }
  0xf8   : > { %574 = vrot.lane.b32.xlu0 %v1488_v13, %s1389_s16 }
 0x167   : > { %v451_v15 = vpop.xlane.xlu0 %450 }
 0x168   : > { %v452_v16 = vsub.f32 %v448_v7, %v451_v15 }
 0x16a   : > { %v453_v17 = vmul.f32 1.442695, %v452_v16 }
 0x16b   : > { %v515_v18 = vpop.permute.xlu0 %514 }
 0x16c   : > { %1345 = vpow2.f32 %v453_v17  ;;  %v520_v20 = vsel %vm401_vm1, %v515_v18, 0 }
 0x16f   : > { %v575_v33 = vpop.permute.xlu0 %574 }
 0x170   : > { %v580_v34 = vsel %vm462_vm2, %v575_v33, 0 }
 0x171   : > { %1263 = vmatpush3.bf16.msra.mxu0 %v580_v34 }
 0x172   : > { %1274 = vmatprep.subr.bf16.mxu0 %v1387_v0 }
 0x179   : > { %v1346_v19 = vpop.eup %1345 }
 0x17a   : > { %v458_v21 = vpack.c.bf16 %v1346_v19, %v1346_v19  ;;  %v455_v41 = vsel %vm401_vm1, %v1346_v19, 0.0 }
 0x17c   : > { %1253 = vmatmul.mubr.msk.bf16.vlgmr.msra.gmra.mxu1 %vm401_vm1, %v458_v21 }
 0x17d   : > { %1257 = vmatpush3.bf16.xpose.msra.mxu1 %v520_v20  ;;  %1258 = vmatprep.mubr.msk.bf16.mxu1 %vm1388_vm0, %v1387_v0 }
 0x17e   : > { %1268 = vmatprep.subr.bf16.mxu1 %v1387_v0 }
 0x184   : > { %1259 = vmatmul.mubr.msk.bf16.vlgmr.msra.gmra.mxu1 %vm401_vm1, %v512_v22 }
 0x185   : > { %1270 = vmatprep.mubr.msk.bf16.mxu1 %vm1388_vm0, %v1387_v0  ;;  %1269 = vmatpush3.bf16.msra.mxu1 %v630_v45 }
 0x186   : > { %1280 = vmatprep.subr.bf16.mxu1 %v1387_v0 }
 0x23c   : > { %v500_v23 = vpop.f32.mrf.mxu1 }
 0x23e   : > { %v1254_v24 = vpop.f32.mrf.mxu1 }
 0x240   : > { %v503_v25 = vpop.f32.mrf.mxu1 }
 0x241   : > { %v830_v25 = vld [vmem:[%s1606_s4 + $0x8] sm:$0xf] }
 0x242   : > { %v1255_v26 = vpop.f32.mrf.mxu1 }
 0x243   : > { %v835_v26 = vsel %vm462_vm2, %v830_v25, 0 }
 0x244   : > { %v556_v27 = vpop.f32.mrf.mxu1 }
 0x245   : > { %v562_v28 = vmul.f32 0.35355338, %v556_v27 }
 0x246   : > { %v1260_v29 = vpop.f32.mrf.mxu1 }
 0x247   : > { %v563_v30 = vsel %vm401_vm1, %v562_v28, -inf }
 0x248   : > { %564 = vmax.xlane.f32.xlu1 %v563_v30  ;;  %v559_v31 = vpop.f32.mrf.mxu1 }
 0x24a   : > { %v1261_v32 = vpop.f32.mrf.mxu1 }
 0x259   : > { %720 = vrot.lane.b32.xlu1 %v1467_v2, %s1390_s20 }
 0x25d   : > { %718 = vrot.lane.b32.xlu1 %v1476_v5, %s1390_s20 }
 0x2d1   : > { %v565_v35 = vpop.xlane.xlu1 %564 }
 0x2d2   : > { %v566_v36 = vsub.f32 %v562_v28, %v565_v35 }
 0x2d4   : > { %v567_v37 = vmul.f32 1.442695, %v566_v36 }
 0x2d5   : > { %v721_v53 = vpop.permute.xlu1 %720 }
 0x2d6   : > { %1347 = vpow2.f32 %v567_v37  ;;  %v726_v57 = vsel %vm401_vm1, %v721_v53, 0 }
 0x2d9   : > { %v719_v60 = vpop.permute.xlu1 %718 }
 0x2e3   : > { %v1348_v38 = vpop.eup %1347 }
 0x2e4   : > { %v569_v39 = vsel %vm401_vm1, %v1348_v38, 0.0  ;;  %v572_v40 = vpack.c.bf16 %v1348_v38, %v1348_v38 }
 0x2e5   : > { %570 = vadd.xlane.f32.xlu0 %v569_v39 }
 0x2e6   : > { %1265 = vmatmul.mubr.msk.bf16.vlgmr.msra.gmra.mxu0 %vm401_vm1, %v572_v40 }
 0x2e7   : > { %1276 = vmatprep.mubr.msk.bf16.mxu0 %vm1388_vm0, %v1387_v0  ;;  %1275 = vmatpush3.bf16.msra.mxu0 %v676_v43 }
 0x2e8   : > { %1286 = vmatprep.subr.bf16.mxu0 %v1387_v0 }
 0x2e9   : > { %456 = vadd.xlane.f32.xlu0 %v455_v41 }
 0x2ff   : > { %779 = vrot.lane.b32.xlu0 %v1488_v13, %s1390_s20 }
 0x303   : > { %880 = vrot.lane.b32.xlu0 %v1467_v2, %s1391_s25 }
 0x307   : > { %878 = vrot.lane.b32.xlu0 %v1476_v5, %s1391_s25 }
 0x36e   : > { %v571_v46 = vpop.xlane.xlu0 %570 }
 0x372   : > { %v457_v47 = vpop.xlane.xlu0 %456 }
 0x373   : > { %1349 = vrcp.f32 %v457_v47 }
 0x374   : > { %1351 = vrcp.f32 %v571_v46 }
 0x376   : > { %v780_v15 = vpop.permute.xlu0 %779 }
 0x377   : > { %v785_v5 = vsel %vm462_vm2, %v780_v15, 0 }
 0x37a   : > { %v881_v19 = vpop.permute.xlu0 %880 }
 0x37b   : > { %v886_v21 = vsel %vm401_vm1, %v881_v19, 0  ;;  %v1216_v19 = vld [vmem:[%s1608_s6] ss:$0 sm:$0xff] }
 0x37e   : > { %v879_v24 = vpop.permute.xlu0 %878 }
 0x380   : > { %v1350_v48 = vpop.eup %1349 }
 0x381   : > { %v507_v49 = vmul.f32 %v1350_v48, %v500_v23  ;;  %v1352_v51 = vpop.eup %1351  ;;  %v990_v48 = vld [vmem:[%s1606_s4 + $0xc] sm:$0xf] }
 0x383   : > { %v508_v50 = vpack.c.bf16 %v507_v49, %v507_v49 }
 0x385   : > { %1277 = vmatmul.mubr.msk.bf16.vlgmr.msra.gmra.mxu0 %vm401_vm1, %v508_v50 }
 0x386   : > { %1288 = vmatprep.mubr.msk.bf16.mxu0 %vm1388_vm0, %v1387_v0  ;;  %1287 = vmatpush3.bf16.msra.mxu0 %v785_v5 }
 0x387   : > { %1298 = vmatprep.subr.bf16.mxu0 %v1387_v0 }
 0x3a6   : > { %v616_v52 = vpop.f32.mrf.mxu0 }
 0x3a7   : > { %v623_v54 = vmul.f32 %v1352_v51, %v616_v52 }
 0x3a8   : > { %v1266_v55 = vpop.f32.mrf.mxu0 }
 0x3a9   : > { %v624_v56 = vpack.c.bf16 %v623_v54, %v623_v54 }
 0x3aa   : > { %v619_v58 = vpop.f32.mrf.mxu0 }
 0x3ab   : > { %1271 = vmatmul.mubr.msk.bf16.vlgmr.msra.gmra.mxu1 %vm401_vm1, %v624_v56 }
 0x3ac   : > { %1281 = vmatpush3.bf16.xpose.msra.mxu1 %v726_v57  ;;  %v1267_v59 = vpop.f32.mrf.mxu0  ;;  %1282 = vmatprep.mubr.msk.bf16.mxu1 %vm1388_vm0, %v1387_v0 }
 0x3ad   : > { %1292 = vmatprep.subr.bf16.mxu1 %v1387_v0 }
 0x3b3   : > { %1283 = vmatmul.mubr.msk.bf16.vlgmr.msra.gmra.mxu1 %vm401_vm1, %v719_v60 }
 0x3b4   : > { %1294 = vmatprep.mubr.msk.bf16.mxu1 %vm1388_vm0, %v1387_v0  ;;  %1293 = vmatpush3.bf16.msra.mxu1 %v835_v26 }
 0x3b5   : > { %1304 = vmatprep.subr.bf16.mxu1 %v1387_v0 }
 0x445   : > { %v712_v61 = vpop.f32.mrf.mxu0 }
 0x447   : > { %v1278_v62 = vpop.f32.mrf.mxu0 }
 0x449   : > { %v715_v63 = vpop.f32.mrf.mxu0 }
 0x44a   : > { %v1215_v63 = vld [vmem:[%s1607_s5] ss:$0 sm:$0xff] }
 0x44b   : > { %v1279_v1 = vpop.f32.mrf.mxu0 }
 0x46b   : > { %v666_v3 = vpop.f32.mrf.mxu1 }
 0x46c   : > { %v1539_v4 = vadd.f32 %v712_v61, %v666_v3 }
 0x46d   : > { %v1272_v6 = vpop.f32.mrf.mxu1 }
 0x46f   : > { %v669_v7 = vpop.f32.mrf.mxu1 }
 0x471   : > { %v1273_v8 = vpop.f32.mrf.mxu1 }
 0x473   : > { %v762_v9 = vpop.f32.mrf.mxu1 }
 0x474   : > { %v768_v10 = vmul.f32 0.35355338, %v762_v9 }
 0x475   : > { %v1284_v11 = vpop.f32.mrf.mxu1 }
 0x476   : > { %v769_v12 = vsel %vm401_vm1, %v768_v10, -inf }
 0x477   : > { %770 = vmax.xlane.f32.xlu1 %v769_v12  ;;  %v765_v2 = vpop.f32.mrf.mxu1 }
 0x479   : > { %v1285_v14 = vpop.f32.mrf.mxu1 }
 0x500   : > { %v771_v16 = vpop.xlane.xlu1 %770 }
 0x501   : > { %v772_v17 = vsub.f32 %v768_v10, %v771_v16 }
 0x503   : > { %v773_v18 = vmul.f32 1.442695, %v772_v17 }
 0x505   : > { %1353 = vpow2.f32 %v773_v18 }
 0x512   : > { %v1354_v20 = vpop.eup %1353 }
 0x513   : > { %v775_v22 = vsel %vm401_vm1, %v1354_v20, 0.0  ;;  %v778_v23 = vpack.c.bf16 %v1354_v20, %v1354_v20 }
 0x514   : > { %776 = vadd.xlane.f32.xlu0 %v775_v22 }
 0x515   : > { %1289 = vmatmul.mubr.msk.bf16.vlgmr.msra.gmra.mxu0 %vm401_vm1, %v778_v23 }
 0x516   : > { %1299 = vmatpush3.bf16.xpose.msra.mxu0 %v886_v21  ;;  %1300 = vmatprep.mubr.msk.bf16.mxu0 %vm1388_vm0, %v1387_v0  ;;  %v1217_v21 = vld [vmem:[%s1609_s7] ss:$0 sm:$0xff] }
 0x517   : > { %1310 = vmatprep.subr.bf16.mxu0 %v1387_v0 }
 0x51d   : > { %1301 = vmatmul.mubr.msk.bf16.vlgmr.msra.gmra.mxu0 %vm401_vm1, %v879_v24 }
 0x51e   : > { %1312 = vmatprep.mubr.msk.bf16.mxu0 %vm1388_vm0, %v1387_v0 }
 0x59d   : > { %v777_v27 = vpop.xlane.xlu0 %776 }
 0x59e   : > { %1355 = vrcp.f32 %v777_v27 }
 0x5ab   : > { %v1356_v28 = vpop.eup %1355 }
 0x5d5   : > { %v821_v29 = vpop.f32.mrf.mxu0 }
 0x5d6   : > { %v828_v30 = vmul.f32 %v1356_v28, %v821_v29 }
 0x5d7   : > { %v1290_v31 = vpop.f32.mrf.mxu0 }
 0x5d8   : > { %v829_v32 = vpack.c.bf16 %v828_v30, %v828_v30 }
 0x5d9   : > { %v824_v33 = vpop.f32.mrf.mxu0 }
 0x5da   : > { %1295 = vmatmul.mubr.msk.bf16.vlgmr.msra.gmra.mxu1 %vm401_vm1, %v829_v32 }
 0x5db   : > { %v1291_v34 = vpop.f32.mrf.mxu0  ;;  %1306 = vmatprep.mubr.msk.bf16.mxu1 %vm1388_vm0, %v1387_v0 }
 0x5dd   : > { %v922_v35 = vpop.f32.mrf.mxu0 }
 0x5de   : > { %v928_v36 = vmul.f32 0.35355338, %v922_v35 }
 0x5df   : > { %v1302_v37 = vpop.f32.mrf.mxu0 }
 0x5e0   : > { %v929_v38 = vsel %vm401_vm1, %v928_v36, -inf }
 0x5e1   : > { %930 = vmax.xlane.f32.xlu1 %v929_v38  ;;  %v925_v39 = vpop.f32.mrf.mxu0 }
 0x5e3   : > { %v1303_v40 = vpop.f32.mrf.mxu0 }
 0x5f2   : > { %939 = vrot.lane.b32.xlu1 %v1488_v13, %s1391_s25  ;;  %v995_v13 = vsel %vm462_vm2, %v990_v48, 0 }
 0x5f3   : > { %1311 = vmatpush3.bf16.msra.mxu0 %v995_v13 }
 0x66a   : > { %v931_v41 = vpop.xlane.xlu1 %930 }
 0x66b   : > { %v932_v42 = vsub.f32 %v928_v36, %v931_v41 }
 0x66d   : > { %v933_v43 = vmul.f32 1.442695, %v932_v42 }
 0x66e   : > { %v940_v44 = vpop.permute.xlu1 %939 }
 0x66f   : > { %1357 = vpow2.f32 %v933_v43  ;;  %v945_v45 = vsel %vm462_vm2, %v940_v44, 0 }
 0x670   : > { %1305 = vmatpush3.bf16.msra.mxu1 %v945_v45 }
 0x67c   : > { %v1358_v0 = vpop.eup %1357 }
 0x67d   : > { %v935_v46 = vsel %vm401_vm1, %v1358_v0, 0.0  ;;  %v938_v47 = vpack.c.bf16 %v1358_v0, %v1358_v0 }
 0x67e   : > { %936 = vadd.xlane.f32.xlu1 %v935_v46 }
 0x67f   : > { %1307 = vmatmul.mubr.msk.bf16.vlgmr.msra.gmra.mxu1 %vm401_vm1, %v938_v47 }
 0x69a   : > { %v871_v49 = vpop.f32.mrf.mxu1 }
 0x69b   : > { %v877_v50 = vadd.f32 %v871_v49, %v1539_v4  ;;  %v1046_v4 = vld [vmem:[%s386_s14] sm:$0xff] }
 0x69c   : > { %v1296_v51 = vpop.f32.mrf.mxu1 }
 0x69e   : > { %v874_v52 = vpop.f32.mrf.mxu1 }
 0x6a0   : > { %v1297_v53 = vpop.f32.mrf.mxu1 }
 0x707   : > { %v937_v54 = vpop.xlane.xlu1 %936 }
 0x708   : > { %1359 = vrcp.f32 %v937_v54 }
 0x715   : > { %v1360_v55 = vpop.eup %1359 }
 0x73f   : > { %v981_v56 = vpop.f32.mrf.mxu1 }
 0x740   : > { %v988_v57 = vmul.f32 %v1360_v55, %v981_v56 }
 0x741   : > { %v1308_v58 = vpop.f32.mrf.mxu1 }
 0x742   : > { %v989_v59 = vpack.c.bf16 %v988_v57, %v988_v57 }
 0x743   : > { %v984_v60 = vpop.f32.mrf.mxu1 }
 0x744   : > { %1313 = vmatmul.mubr.msk.bf16.vlgmr.msra.gmra.mxu0 %vm401_vm1, %v989_v59 }
 0x745   : > { %v1309_v61 = vpop.f32.mrf.mxu1 }
 0x804   : > { %v1031_v62 = vpop.f32.mrf.mxu0 }
 0x805   : > { %v1037_v1 = vadd.f32 %v1031_v62, %v877_v50 }
 0x806   : > { %v1314_v3 = vpop.f32.mrf.mxu0 }
 0x807   : > { %v1045_v6 = vadd.f32 %v1215_v63, %v1037_v1 }
 0x808   : > { %v1034_v7 = vpop.f32.mrf.mxu0 }
 0x809   : > { %v1047_v8 = vadd.f32 %v1046_v4, %v1045_v6 }
 0x80a   : > { %v1315_v9 = vpop.f32.mrf.mxu0 }
 0x80b   : > { %v1049_v10 = vsel %vm1048_vm3, %v1047_v8, 0.0 }
 0x80c   : > { %1050 = vadd.xlane.f32.xlu0 %v1049_v10 }
 0x895   : > { %v1051_v11 = vpop.xlane.xlu0 %1050 }
 0x896   : > { %v1053_v12 = vmul.f32 0.03125, %v1051_v11 }
 0x898   : > { %v1054_v2 = vsub.f32 %v1047_v8, %v1053_v12 }
 0x89a   : > { %v1055_v14 = vmul.f32 %v1054_v2, %v1054_v2 }
 0x89c   : > { %v1056_v15 = vsel %vm1048_vm3, %v1055_v14, 0.0 }
 0x89d   : > { %1057 = vadd.xlane.f32.xlu0 %v1056_v15 }
 0x926   : > { %v1058_v5 = vpop.xlane.xlu0 %1057 }
 0x927   : > { %v1059_v16 = vmul.f32 0.03125, %v1058_v5 }
 0x929   : > { %v1060_v17 = vadd.f32 1e-05, %v1059_v16 }
 0x92b   : > { %1361 = vrsqrt.f32 %v1060_v17 }
 0x938   : > { %v1362_v18 = vpop.eup %1361 }
 0x939   : > { %v1062_v20 = vmul.f32 %v1362_v18, %v1054_v2 }
 0x93b   : > { %v1070_v22 = vmul.f32 %v1216_v19, %v1062_v20 }
 0x93d   : > { %v1078_v23 = vadd.f32 %v1217_v21, %v1070_v22 }
 0x93f   : > { %1079 = vst.msk [vmem:[%s393_s23] sm:$0xff] %vm1048_vm3, %v1078_v23 }
 0x940 PF: > { %s18_s29 = sadd.s32 1, %s1385_s29   ;;  %s1611_s27 = smov %s1381_s28 }
 0x941   : > { %p15_p5 = scmp.ge.s32.totalorder %s18_s29, 4   ;;  %s1612_s28 = smov %s1614_s30 }
 0x943   :  { %17 = sbr.rel (!%p15_p5) target bundleno = 2 (0x2), region = 91 }

</bundles_post_ra>
